<compile_context>
chip_gen: v7x
topology: tpu7x:2x2x1
jax: 0.10.0
libtpu: 0.0.40
codegen_flags: <defaults>
</compile_context>

<pallas_src>
import math
import functools

import jax
import jax.numpy as jnp
from jax import lax
from jax.experimental import pallas as pl
from jax.experimental.pallas import tpu as pltpu


LN_EPS = 1e-5


def _layer_norm(x, gamma, beta):
    mu = jnp.mean(x, axis=-1, keepdims=True)
    var = jnp.mean((x - mu) ** 2, axis=-1, keepdims=True)
    return (x - mu) * lax.rsqrt(var + LN_EPS) * gamma + beta


# ------------------------------------------------------------------
# Fused BERT encoder kernel: grid = (batch, layer).
# The output block (same index across the layer axis) is the resident
# carry for the residual stream.  valid_lens arrives via scalar prefetch.
# ------------------------------------------------------------------
def _bert_encoder_kernel(num_heads, head_dim,
                         vl_ref, x_ref,
                         wq_r, bq_r, wk_r, bk_r, wv_r, bv_r, wo_r, bo_r,
                         g1_r, be1_r, w1_r, b1_r, w2_r, b2_r, g2_r, be2_r,
                         out_ref):
    b = pl.program_id(0)
    l = pl.program_id(1)
    vl = vl_ref[b]                       # valid length for this batch element

    @pl.when(l == 0)
    def _():                             # seed the carry with the embeddings
        out_ref[0] = x_ref[0]

    x = out_ref[0]                       # (S, H) f32 residual stream
    S, H = x.shape
    xb = x.astype(jnp.bfloat16)

    # QKV projections (bf16 MXU, f32 accumulation)
    q = jnp.dot(xb, wq_r[0], preferred_element_type=jnp.float32) + bq_r[0]
    k = jnp.dot(xb, wk_r[0], preferred_element_type=jnp.float32) + bk_r[0]
    v = jnp.dot(xb, wv_r[0], preferred_element_type=jnp.float32) + bv_r[0]

    scale = jnp.float32(1.0 / math.sqrt(head_dim))
    col = lax.broadcasted_iota(jnp.int32, (S, S), 1)   # hoisted: built once per step
    key_mask = col < vl
    wo = wo_r[0]                                       # (H, H) bf16

    # Per-head attention; head outputs are projected through the matching row
    # slice of W_o and accumulated (no concatenate, lane-dense accumulator).
    acc = jnp.zeros((S, H), jnp.float32)
    for h in range(num_heads):                         # static unrolled, small
        lo = h * head_dim
        qh = q[:, lo:lo + head_dim].astype(jnp.bfloat16)
        kh = k[:, lo:lo + head_dim].astype(jnp.bfloat16)
        vh = v[:, lo:lo + head_dim].astype(jnp.bfloat16)
        s = lax.dot_general(qh, kh, (((1,), (1,)), ((), ())),
                            preferred_element_type=jnp.float32) * scale
        # d2l masked_softmax: key positions >= valid_len get -1e6 (f32 math)
        s = jnp.where(key_mask, s, jnp.float32(-1e6))
        s = s - jnp.max(s, axis=-1, keepdims=True)
        e = jnp.exp(s)
        p = e * pl.reciprocal(jnp.sum(e, axis=-1, keepdims=True), approx=True)
        ctx = jnp.dot(p.astype(jnp.bfloat16), vh,
                      preferred_element_type=jnp.float32)
        acc = acc + jnp.dot(ctx.astype(jnp.bfloat16), wo[lo:lo + head_dim, :],
                            preferred_element_type=jnp.float32)

    attn_out = acc + bo_r[0]

    # AddNorm 1 (f32)
    y = _layer_norm(x + attn_out, g1_r[0], be1_r[0])

    # PositionWiseFFN (bf16 MXU)
    f = jnp.dot(y.astype(jnp.bfloat16), w1_r[0],
                preferred_element_type=jnp.float32) + b1_r[0]
    f = jnp.maximum(f, 0.0)
    f = jnp.dot(f.astype(jnp.bfloat16), w2_r[0],
                preferred_element_type=jnp.float32) + b2_r[0]

    # AddNorm 2 (f32) -> carry / output
    out_ref[0] = _layer_norm(y + f, g2_r[0], be2_r[0])


_LAYER_WEIGHT_NAMES = ('wq', 'bq', 'wk', 'bk', 'wv', 'bv', 'wo', 'bo',
                       'g1', 'be1', 'w1', 'b1', 'w2', 'b2', 'g2', 'be2')
_BF16_NAMES = frozenset({'wq', 'wk', 'wv', 'wo', 'w1', 'w2'})


def stack_layer_params(layer_params):
    """Stack per-layer params on a leading layer axis; matmul weights -> bf16."""
    stacked = []
    for name in _LAYER_WEIGHT_NAMES:
        arr = jnp.stack([lp[name] for lp in layer_params])
        if name in _BF16_NAMES:
            arr = arr.astype(jnp.bfloat16)
        stacked.append(arr)
    return stacked


def bert_encoder(x, valid_lens, stacked_weights, num_heads):
    B, S, H = x.shape
    L = stacked_weights[0].shape[0]
    head_dim = H // num_heads

    def wspec(arr):
        # weight block changes with the layer axis -> default double-buffering
        # prefetches the next layer's weights while this layer computes.
        return pl.BlockSpec((1,) + arr.shape[1:], lambda b, l, vl: (l, 0, 0))

    x_spec = pl.BlockSpec((1, S, H), lambda b, l, vl: (b, 0, 0))
    kernel = functools.partial(_bert_encoder_kernel, num_heads, head_dim)

    return pl.pallas_call(
        kernel,
        out_shape=jax.ShapeDtypeStruct((B, S, H), jnp.float32),
        grid_spec=pltpu.PrefetchScalarGridSpec(
            num_scalar_prefetch=1,
            grid=(B, L),
            in_specs=[x_spec] + [wspec(a) for a in stacked_weights],
            out_specs=x_spec,
        ),
        compiler_params=pltpu.CompilerParams(
            dimension_semantics=("parallel", "arbitrary")),
    )(valid_lens.astype(jnp.int32), x.astype(jnp.float32), *stacked_weights)


# ------------------------------------------------------------------
# MaskLM head: Linear -> ReLU -> LayerNorm -> Linear(vocab), with the vocab
# projection tiled on a grid.  The hidden MLP is computed once (grid step 0)
# into a VMEM scratch and reused for every vocab tile.
# ------------------------------------------------------------------
def _mlm_head_kernel(x_ref, w1_r, b1_r, g_r, be_r, w2_r, b2_r, o_ref, h_ref):
    @pl.when(pl.program_id(0) == 0)
    def _():
        h = jnp.dot(x_ref[...].astype(jnp.bfloat16), w1_r[...],
                    preferred_element_type=jnp.float32) + b1_r[...]
        h = jnp.maximum(h, 0.0)
        h_ref[...] = _layer_norm(h, g_r[...], be_r[...])
    o_ref[...] = jnp.dot(h_ref[...].astype(jnp.bfloat16), w2_r[...],
                         preferred_element_type=jnp.float32) + b2_r[...]


def mlm_head(masked_x, params):
    N, H = masked_x.shape
    V = params['mlm_w2'].shape[1]
    if V % 128 == 0:
        TV = 512 if V % 512 == 0 else 128      # lane-dense vocab tiles
    else:
        # TODO(synk): pad the vocab to a multiple of 128 for real BERT vocab sizes.
        TV = V
    nv = V // TV
    inv = lambda j: (0, 0)                     # grid-invariant inputs

    return pl.pallas_call(
        _mlm_head_kernel,
        out_shape=jax.ShapeDtypeStruct((N, V), jnp.float32),
        grid_spec=pltpu.PrefetchScalarGridSpec(
            num_scalar_prefetch=0,
            grid=(nv,),
            in_specs=[
                pl.BlockSpec((N, H), inv),                 # masked_x
                pl.BlockSpec((H, H), inv),                 # w1
                pl.BlockSpec((1, H), inv),                 # b1
                pl.BlockSpec((1, H), inv),                 # ln gamma
                pl.BlockSpec((1, H), inv),                 # ln beta
                pl.BlockSpec((H, TV), lambda j: (0, j)),   # w2 vocab tile
                pl.BlockSpec((1, TV), lambda j: (0, j)),   # b2 vocab tile
            ],
            out_specs=pl.BlockSpec((N, TV), lambda j: (0, j)),
            scratch_shapes=[pltpu.VMEM((N, H), jnp.float32)],
        ),
        compiler_params=pltpu.CompilerParams(dimension_semantics=("arbitrary",)),
    )(masked_x,
      params['mlm_w1'].astype(jnp.bfloat16), params['mlm_b1'],
      params['mlm_g'], params['mlm_be'],
      params['mlm_w2'].astype(jnp.bfloat16), params['mlm_b2'])


# ------------------------------------------------------------------
# NSP head: hidden = tanh(cls @ Wh + bh); nsp = hidden @ Wn + bn.
# The 2-wide output is padded to 128 lanes (unmasked stores) and sliced outside.
# ------------------------------------------------------------------
_NSP_PAD = 128


def _nsp_head_kernel(x_ref, wh_r, bh_r, wn_r, bn_r, o_ref):
    h = jnp.tanh(jnp.dot(x_ref[...].astype(jnp.bfloat16), wh_r[...],
                         preferred_element_type=jnp.float32) + bh_r[...])
    o_ref[...] = jnp.dot(h.astype(jnp.bfloat16), wn_r[...],
                         preferred_element_type=jnp.float32) + bn_r[...]


def nsp_head(cls_x, params):
    B, H = cls_x.shape
    wn = jnp.zeros((H, _NSP_PAD), jnp.float32).at[:, :2].set(params['nsp_w'])
    bn = jnp.zeros((1, _NSP_PAD), jnp.float32).at[:, :2].set(params['nsp_b'])
    out = pl.pallas_call(
        _nsp_head_kernel,
        out_shape=jax.ShapeDtypeStruct((B, _NSP_PAD), jnp.float32),
    )(cls_x, params['hid_w'].astype(jnp.bfloat16), params['hid_b'],
      wn.astype(jnp.bfloat16), bn)
    return out[:, :2]


# ------------------------------------------------------------------
# Parameters (deterministic, synthetic)
# ------------------------------------------------------------------
def init_params(key, vocab, H, F, num_layers, max_len):
    keys = iter(jax.random.split(key, 64))

    def nrm(shape, scale=0.02):
        return (scale * jax.random.normal(next(keys), shape)).astype(jnp.float32)

    def zeros(shape):
        return jnp.zeros(shape, jnp.float32)

    def ones(shape):
        return jnp.ones(shape, jnp.float32)

    params = {
        'tok_emb': nrm((vocab, H), 1.0),
        'seg_emb': nrm((2, H), 1.0),
        'pos_emb': nrm((1, max_len, H), 1.0),
        'layers': [],
        'hid_w': nrm((H, H)), 'hid_b': zeros((1, H)),
        'mlm_w1': nrm((H, H)), 'mlm_b1': zeros((1, H)),
        'mlm_g': ones((1, H)), 'mlm_be': zeros((1, H)),
        'mlm_w2': nrm((H, vocab)), 'mlm_b2': zeros((1, vocab)),
        'nsp_w': nrm((H, 2)), 'nsp_b': zeros((1, 2)),
    }
    for _ in range(num_layers):
        params['layers'].append(dict(
            wq=nrm((H, H)), bq=zeros((1, H)),
            wk=nrm((H, H)), bk=zeros((1, H)),
            wv=nrm((H, H)), bv=zeros((1, H)),
            wo=nrm((H, H)), bo=zeros((1, H)),
            g1=ones((1, H)), be1=zeros((1, H)),
            w1=nrm((H, F)), b1=zeros((1, F)),
            w2=nrm((F, H)), b2=zeros((1, H)),
            g2=ones((1, H)), be2=zeros((1, H)),
        ))
    return params


# ------------------------------------------------------------------
# Full BERTModel forward
# ------------------------------------------------------------------
def bert_model(params, tokens, segments, valid_lens, pred_positions, num_heads):
    B, S = tokens.shape
    # BERTEncoder input representation (embedding gathers = glue)
    X = params['tok_emb'][tokens] + params['seg_emb'][segments]
    X = (X + params['pos_emb'][:, :S, :]).astype(jnp.float32)

    stacked = stack_layer_params(params['layers'])
    encoded_X = bert_encoder(X, valid_lens, stacked, num_heads)

    # MaskLM: gather predicted positions (glue), MLP in Pallas
    P = pred_positions.shape[1]
    batch_idx = jnp.repeat(jnp.arange(B), P)
    flat_pos = pred_positions.reshape(-1)
    masked_X = encoded_X[batch_idx, flat_pos]          # (B*P, H)
    mlm_Y_hat = mlm_head(masked_X, params).reshape(B, P, -1)

    # NSP: hidden(tanh) + output linear on the <cls> token
    nsp_Y_hat = nsp_head(encoded_X[:, 0, :], params)
    return encoded_X, mlm_Y_hat, nsp_Y_hat


if __name__ == "__main__":
    VOCAB, H, S, B = 64, 32, 8, 2
    HEADS, LAYERS, FFN, MAXLEN, P = 2, 2, 64, 16, 3

    key = jax.random.PRNGKey(0)
    pkey, tkey, skey, ppkey = jax.random.split(key, 4)

    params = init_params(pkey, VOCAB, H, FFN, LAYERS, MAXLEN)
    tokens = jax.random.randint(tkey, (B, S), 0, VOCAB, dtype=jnp.int32)
    segments = jax.random.randint(skey, (B, S), 0, 2, dtype=jnp.int32)
    valid_lens = jnp.array([S, 5], dtype=jnp.int32)
    pred_positions = jax.random.randint(ppkey, (B, P), 0, S, dtype=jnp.int32)

    encoded_X, mlm_Y_hat, nsp_Y_hat = bert_model(
        params, tokens, segments, valid_lens, pred_positions, HEADS)
    jax.block_until_ready((encoded_X, mlm_Y_hat, nsp_Y_hat))

    assert encoded_X.shape == (B, S, H)
    assert mlm_Y_hat.shape == (B, P, VOCAB)
    assert nsp_Y_hat.shape == (B, 2)
    print("KERNEL_OK")
</pallas_src>

<mosaic_0001>
module attributes {stable_mosaic.version = 11 : i64} {
  func.func @_bert_encoder_kernel(%arg0: i32, %arg1: i32, %arg2: memref<2xi32, #tpu.memory_space<smem>>, %arg3: memref<1x8x32xf32, #tpu.memory_space<vmem>>, %arg4: memref<1x32x32xbf16, #tpu.memory_space<vmem>>, %arg5: memref<1x1x32xf32, #tpu.memory_space<vmem>>, %arg6: memref<1x32x32xbf16, #tpu.memory_space<vmem>>, %arg7: memref<1x1x32xf32, #tpu.memory_space<vmem>>, %arg8: memref<1x32x32xbf16, #tpu.memory_space<vmem>>, %arg9: memref<1x1x32xf32, #tpu.memory_space<vmem>>, %arg10: memref<1x32x32xbf16, #tpu.memory_space<vmem>>, %arg11: memref<1x1x32xf32, #tpu.memory_space<vmem>>, %arg12: memref<1x1x32xf32, #tpu.memory_space<vmem>>, %arg13: memref<1x1x32xf32, #tpu.memory_space<vmem>>, %arg14: memref<1x32x64xbf16, #tpu.memory_space<vmem>>, %arg15: memref<1x1x64xf32, #tpu.memory_space<vmem>>, %arg16: memref<1x64x32xbf16, #tpu.memory_space<vmem>>, %arg17: memref<1x1x32xf32, #tpu.memory_space<vmem>>, %arg18: memref<1x1x32xf32, #tpu.memory_space<vmem>>, %arg19: memref<1x1x32xf32, #tpu.memory_space<vmem>>, %arg20: memref<1x8x32xf32, #tpu.memory_space<vmem>>) attributes {dimension_semantics = [#tpu.dimension_semantics<parallel>, #tpu.dimension_semantics<arbitrary>], iteration_bounds = array<i64: 2, 2>, scalar_prefetch = 1 : i64, scratch_operands = 0 : i64, tpu.core_type = #tpu.core_type<tc>, window_params = [{transform_indices = @transform_0, window_bounds = array<i64: 1, 8, 32>}, {transform_indices = @transform_1, window_bounds = array<i64: 1, 32, 32>}, {transform_indices = @transform_2, window_bounds = array<i64: 1, 1, 32>}, {transform_indices = @transform_3, window_bounds = array<i64: 1, 32, 32>}, {transform_indices = @transform_4, window_bounds = array<i64: 1, 1, 32>}, {transform_indices = @transform_5, window_bounds = array<i64: 1, 32, 32>}, {transform_indices = @transform_6, window_bounds = array<i64: 1, 1, 32>}, {transform_indices = @transform_7, window_bounds = array<i64: 1, 32, 32>}, {transform_indices = @transform_8, window_bounds = array<i64: 1, 1, 32>}, {transform_indices = @transform_9, window_bounds = array<i64: 1, 1, 32>}, {transform_indices = @transform_10, window_bounds = array<i64: 1, 1, 32>}, {transform_indices = @transform_11, window_bounds = array<i64: 1, 32, 64>}, {transform_indices = @transform_12, window_bounds = array<i64: 1, 1, 64>}, {transform_indices = @transform_13, window_bounds = array<i64: 1, 64, 32>}, {transform_indices = @transform_14, window_bounds = array<i64: 1, 1, 32>}, {transform_indices = @transform_15, window_bounds = array<i64: 1, 1, 32>}, {transform_indices = @transform_16, window_bounds = array<i64: 1, 1, 32>}, {transform_indices = @transform_17, window_bounds = array<i64: 1, 8, 32>}]} {
    %0 = arith.index_cast %arg0 : i32 to index
    %1 = memref.load %arg2[%0] : memref<2xi32, #tpu.memory_space<smem>>
    %c0_i32 = arith.constant 0 : i32
    %2 = arith.cmpi eq, %arg1, %c0_i32 : i32
    %3 = arith.extui %2 : i1 to i32
    %c0_i32_0 = arith.constant 0 : i32
    %4 = arith.cmpi ne, %3, %c0_i32_0 : i32
    scf.if %4 {
      %c0_84 = arith.constant 0 : index
      %c0_85 = arith.constant 0 : index
      %c0_86 = arith.constant 0 : index
      %168 = vector.load %arg3[%c0_84, %c0_85, %c0_86] : memref<1x8x32xf32, #tpu.memory_space<vmem>>, vector<1x8x32xf32>
      %169 = vector.shape_cast %168 : vector<1x8x32xf32> to vector<8x32xf32>
      %c0_87 = arith.constant 0 : index
      %c0_88 = arith.constant 0 : index
      %c0_89 = arith.constant 0 : index
      %170 = vector.load %arg20[%c0_87, %c0_88, %c0_89] : memref<1x8x32xf32, #tpu.memory_space<vmem>>, vector<1x8x32xf32>
      %171 = vector.shape_cast %170 : vector<1x8x32xf32> to vector<8x32xf32>
      %172 = vector.shape_cast %169 : vector<8x32xf32> to vector<1x8x32xf32>
      tpu.vector_store %arg20[%c0_87, %c0_88, %c0_89], %172 {strides = array<i32>} : memref<1x8x32xf32, #tpu.memory_space<vmem>>, vector<1x8x32xf32>,
    } else {
    }
    %c0 = arith.constant 0 : index
    %c0_1 = arith.constant 0 : index
    %c0_2 = arith.constant 0 : index
    %5 = vector.load %arg20[%c0, %c0_1, %c0_2] : memref<1x8x32xf32, #tpu.memory_space<vmem>>, vector<1x8x32xf32>
    %6 = vector.shape_cast %5 : vector<1x8x32xf32> to vector<8x32xf32>
    %7 = arith.truncf %6 : vector<8x32xf32> to vector<8x32xbf16>
    %c0_3 = arith.constant 0 : index
    %c0_4 = arith.constant 0 : index
    %c0_5 = arith.constant 0 : index
    %8 = vector.load %arg4[%c0_3, %c0_4, %c0_5] : memref<1x32x32xbf16, #tpu.memory_space<vmem>>, vector<1x32x32xbf16>
    %9 = vector.shape_cast %8 : vector<1x32x32xbf16> to vector<32x32xbf16>
    %cst = arith.constant dense<0.000000e+00> : vector<8x32xf32>
    %10 = tpu.matmul %7, %9, %cst {dimension_numbers = #tpu.dot_dimension_numbers<[1], [0], [0], [1], [0, 0, 1, 1], [], []>} : vector<8x32xbf16>, vector<32x32xbf16>, vector<8x32xf32> -> vector<8x32xf32>
    %c0_6 = arith.constant 0 : index
    %c0_7 = arith.constant 0 : index
    %c0_8 = arith.constant 0 : index
    %11 = vector.load %arg5[%c0_6, %c0_7, %c0_8] : memref<1x1x32xf32, #tpu.memory_space<vmem>>, vector<1x1x32xf32>
    %12 = vector.shape_cast %11 : vector<1x1x32xf32> to vector<1x32xf32>
    %13 = vector.broadcast %12 : vector<1x32xf32> to vector<8x32xf32>
    %14 = arith.addf %10, %13 : vector<8x32xf32>
    %c0_9 = arith.constant 0 : index
    %c0_10 = arith.constant 0 : index
    %c0_11 = arith.constant 0 : index
    %15 = vector.load %arg6[%c0_9, %c0_10, %c0_11] : memref<1x32x32xbf16, #tpu.memory_space<vmem>>, vector<1x32x32xbf16>
    %16 = vector.shape_cast %15 : vector<1x32x32xbf16> to vector<32x32xbf16>
    %cst_12 = arith.constant dense<0.000000e+00> : vector<8x32xf32>
    %17 = tpu.matmul %7, %16, %cst_12 {dimension_numbers = #tpu.dot_dimension_numbers<[1], [0], [0], [1], [0, 0, 1, 1], [], []>} : vector<8x32xbf16>, vector<32x32xbf16>, vector<8x32xf32> -> vector<8x32xf32>
    %c0_13 = arith.constant 0 : index
    %c0_14 = arith.constant 0 : index
    %c0_15 = arith.constant 0 : index
    %18 = vector.load %arg7[%c0_13, %c0_14, %c0_15] : memref<1x1x32xf32, #tpu.memory_space<vmem>>, vector<1x1x32xf32>
    %19 = vector.shape_cast %18 : vector<1x1x32xf32> to vector<1x32xf32>
    %20 = vector.broadcast %19 : vector<1x32xf32> to vector<8x32xf32>
    %21 = arith.addf %17, %20 : vector<8x32xf32>
    %c0_16 = arith.constant 0 : index
    %c0_17 = arith.constant 0 : index
    %c0_18 = arith.constant 0 : index
    %22 = vector.load %arg8[%c0_16, %c0_17, %c0_18] : memref<1x32x32xbf16, #tpu.memory_space<vmem>>, vector<1x32x32xbf16>
    %23 = vector.shape_cast %22 : vector<1x32x32xbf16> to vector<32x32xbf16>
    %cst_19 = arith.constant dense<0.000000e+00> : vector<8x32xf32>
    %24 = tpu.matmul %7, %23, %cst_19 {dimension_numbers = #tpu.dot_dimension_numbers<[1], [0], [0], [1], [0, 0, 1, 1], [], []>} : vector<8x32xbf16>, vector<32x32xbf16>, vector<8x32xf32> -> vector<8x32xf32>
    %c0_20 = arith.constant 0 : index
    %c0_21 = arith.constant 0 : index
    %c0_22 = arith.constant 0 : index
    %25 = vector.load %arg9[%c0_20, %c0_21, %c0_22] : memref<1x1x32xf32, #tpu.memory_space<vmem>>, vector<1x1x32xf32>
    %26 = vector.shape_cast %25 : vector<1x1x32xf32> to vector<1x32xf32>
    %27 = vector.broadcast %26 : vector<1x32xf32> to vector<8x32xf32>
    %28 = arith.addf %24, %27 : vector<8x32xf32>
    %29 = tpu.iota {dimensions = array<i32: 1>} : vector<8x8xi32>
    %30 = vector.broadcast %1 : i32 to vector<8x8xi32>
    %31 = arith.cmpi slt, %29, %30 : vector<8x8xi32>
    %c0_23 = arith.constant 0 : index
    %c0_24 = arith.constant 0 : index
    %c0_25 = arith.constant 0 : index
    %32 = vector.load %arg10[%c0_23, %c0_24, %c0_25] : memref<1x32x32xbf16, #tpu.memory_space<vmem>>, vector<1x32x32xbf16>
    %33 = vector.shape_cast %32 : vector<1x32x32xbf16> to vector<32x32xbf16>
    %cst_26 = arith.constant 0.000000e+00 : f32
    %34 = vector.broadcast %cst_26 : f32 to vector<8x32xf32>
    %35 = vector.extract_strided_slice %14 {offsets = [0, 0], sizes = [8, 16], strides = [1, 1]} : vector<8x32xf32> to vector<8x16xf32>
    %36 = arith.truncf %35 : vector<8x16xf32> to vector<8x16xbf16>
    %37 = vector.extract_strided_slice %21 {offsets = [0, 0], sizes = [8, 16], strides = [1, 1]} : vector<8x32xf32> to vector<8x16xf32>
    %38 = arith.truncf %37 : vector<8x16xf32> to vector<8x16xbf16>
    %39 = vector.extract_strided_slice %28 {offsets = [0, 0], sizes = [8, 16], strides = [1, 1]} : vector<8x32xf32> to vector<8x16xf32>
    %40 = arith.truncf %39 : vector<8x16xf32> to vector<8x16xbf16>
    %cst_27 = arith.constant dense<0.000000e+00> : vector<8x8xf32>
    %41 = tpu.matmul %36, %38, %cst_27 {dimension_numbers = #tpu.dot_dimension_numbers<[1], [1], [0], [0], [0, 0, 1, 0], [], []>} : vector<8x16xbf16>, vector<8x16xbf16>, vector<8x8xf32> -> vector<8x8xf32>
    %cst_28 = arith.constant 2.500000e-01 : f32
    %42 = vector.broadcast %cst_28 : f32 to vector<8x8xf32>
    %43 = arith.mulf %41, %42 : vector<8x8xf32>
    %cst_29 = arith.constant -1.000000e+06 : f32
    %44 = vector.broadcast %cst_29 : f32 to vector<8x8xf32>
    %45 = arith.select %31, %43, %44 : vector<8x8xi1>, vector<8x8xf32>
    %cst_30 = arith.constant dense<0xFF800000> : vector<8xf32>
    %46 = vector.multi_reduction <maximumf>, %45, %cst_30 [1] : vector<8x8xf32> to vector<8xf32>
    %47 = vector.shape_cast %46 : vector<8xf32> to vector<8x1xf32>
    %48 = vector.broadcast %47 : vector<8x1xf32> to vector<8x8xf32>
    %49 = arith.subf %45, %48 : vector<8x8xf32>
    %50 = math.exp %49 : vector<8x8xf32>
    %cst_31 = arith.constant dense<0.000000e+00> : vector<8xf32>
    %51 = vector.multi_reduction <add>, %50, %cst_31 [1] : vector<8x8xf32> to vector<8xf32>
    %52 = vector.shape_cast %51 : vector<8xf32> to vector<8x1xf32>
    %53 = tpu.reciprocal %52 {approx = true} : vector<8x1xf32> -> vector<8x1xf32>
    %54 = vector.broadcast %53 : vector<8x1xf32> to vector<8x8xf32>
    %55 = arith.mulf %50, %54 : vector<8x8xf32>
    %56 = arith.truncf %55 : vector<8x8xf32> to vector<8x8xbf16>
    %cst_32 = arith.constant dense<0.000000e+00> : vector<8x16xf32>
    %57 = tpu.matmul %56, %40, %cst_32 {dimension_numbers = #tpu.dot_dimension_numbers<[1], [0], [0], [1], [0, 0, 1, 1], [], []>} : vector<8x8xbf16>, vector<8x16xbf16>, vector<8x16xf32> -> vector<8x16xf32>
    %58 = arith.truncf %57 : vector<8x16xf32> to vector<8x16xbf16>
    %59 = vector.extract_strided_slice %33 {offsets = [0, 0], sizes = [16, 32], strides = [1, 1]} : vector<32x32xbf16> to vector<16x32xbf16>
    %cst_33 = arith.constant dense<0.000000e+00> : vector<8x32xf32>
    %60 = tpu.matmul %58, %59, %cst_33 {dimension_numbers = #tpu.dot_dimension_numbers<[1], [0], [0], [1], [0, 0, 1, 1], [], []>} : vector<8x16xbf16>, vector<16x32xbf16>, vector<8x32xf32> -> vector<8x32xf32>
    %61 = arith.addf %34, %60 : vector<8x32xf32>
    %62 = vector.extract_strided_slice %14 {offsets = [0, 16], sizes = [8, 16], strides = [1, 1]} : vector<8x32xf32> to vector<8x16xf32>
    %63 = arith.truncf %62 : vector<8x16xf32> to vector<8x16xbf16>
    %64 = vector.extract_strided_slice %21 {offsets = [0, 16], sizes = [8, 16], strides = [1, 1]} : vector<8x32xf32> to vector<8x16xf32>
    %65 = arith.truncf %64 : vector<8x16xf32> to vector<8x16xbf16>
    %66 = vector.extract_strided_slice %28 {offsets = [0, 16], sizes = [8, 16], strides = [1, 1]} : vector<8x32xf32> to vector<8x16xf32>
    %67 = arith.truncf %66 : vector<8x16xf32> to vector<8x16xbf16>
    %cst_34 = arith.constant dense<0.000000e+00> : vector<8x8xf32>
    %68 = tpu.matmul %63, %65, %cst_34 {dimension_numbers = #tpu.dot_dimension_numbers<[1], [1], [0], [0], [0, 0, 1, 0], [], []>} : vector<8x16xbf16>, vector<8x16xbf16>, vector<8x8xf32> -> vector<8x8xf32>
    %cst_35 = arith.constant 2.500000e-01 : f32
    %69 = vector.broadcast %cst_35 : f32 to vector<8x8xf32>
    %70 = arith.mulf %68, %69 : vector<8x8xf32>
    %cst_36 = arith.constant -1.000000e+06 : f32
    %71 = vector.broadcast %cst_36 : f32 to vector<8x8xf32>
    %72 = arith.select %31, %70, %71 : vector<8x8xi1>, vector<8x8xf32>
    %cst_37 = arith.constant dense<0xFF800000> : vector<8xf32>
    %73 = vector.multi_reduction <maximumf>, %72, %cst_37 [1] : vector<8x8xf32> to vector<8xf32>
    %74 = vector.shape_cast %73 : vector<8xf32> to vector<8x1xf32>
    %75 = vector.broadcast %74 : vector<8x1xf32> to vector<8x8xf32>
    %76 = arith.subf %72, %75 : vector<8x8xf32>
    %77 = math.exp %76 : vector<8x8xf32>
    %cst_38 = arith.constant dense<0.000000e+00> : vector<8xf32>
    %78 = vector.multi_reduction <add>, %77, %cst_38 [1] : vector<8x8xf32> to vector<8xf32>
    %79 = vector.shape_cast %78 : vector<8xf32> to vector<8x1xf32>
    %80 = tpu.reciprocal %79 {approx = true} : vector<8x1xf32> -> vector<8x1xf32>
    %81 = vector.broadcast %80 : vector<8x1xf32> to vector<8x8xf32>
    %82 = arith.mulf %77, %81 : vector<8x8xf32>
    %83 = arith.truncf %82 : vector<8x8xf32> to vector<8x8xbf16>
    %cst_39 = arith.constant dense<0.000000e+00> : vector<8x16xf32>
    %84 = tpu.matmul %83, %67, %cst_39 {dimension_numbers = #tpu.dot_dimension_numbers<[1], [0], [0], [1], [0, 0, 1, 1], [], []>} : vector<8x8xbf16>, vector<8x16xbf16>, vector<8x16xf32> -> vector<8x16xf32>
    %85 = arith.truncf %84 : vector<8x16xf32> to vector<8x16xbf16>
    %86 = vector.extract_strided_slice %33 {offsets = [16, 0], sizes = [16, 32], strides = [1, 1]} : vector<32x32xbf16> to vector<16x32xbf16>
    %cst_40 = arith.constant dense<0.000000e+00> : vector<8x32xf32>
    %87 = tpu.matmul %85, %86, %cst_40 {dimension_numbers = #tpu.dot_dimension_numbers<[1], [0], [0], [1], [0, 0, 1, 1], [], []>} : vector<8x16xbf16>, vector<16x32xbf16>, vector<8x32xf32> -> vector<8x32xf32>
    %88 = arith.addf %61, %87 : vector<8x32xf32>
    %c0_41 = arith.constant 0 : index
    %c0_42 = arith.constant 0 : index
    %c0_43 = arith.constant 0 : index
    %89 = vector.load %arg11[%c0_41, %c0_42, %c0_43] : memref<1x1x32xf32, #tpu.memory_space<vmem>>, vector<1x1x32xf32>
    %90 = vector.shape_cast %89 : vector<1x1x32xf32> to vector<1x32xf32>
    %91 = vector.broadcast %90 : vector<1x32xf32> to vector<8x32xf32>
    %92 = arith.addf %88, %91 : vector<8x32xf32>
    %93 = arith.addf %6, %92 : vector<8x32xf32>
    %c0_44 = arith.constant 0 : index
    %c0_45 = arith.constant 0 : index
    %c0_46 = arith.constant 0 : index
    %94 = vector.load %arg12[%c0_44, %c0_45, %c0_46] : memref<1x1x32xf32, #tpu.memory_space<vmem>>, vector<1x1x32xf32>
    %95 = vector.shape_cast %94 : vector<1x1x32xf32> to vector<1x32xf32>
    %c0_47 = arith.constant 0 : index
    %c0_48 = arith.constant 0 : index
    %c0_49 = arith.constant 0 : index
    %96 = vector.load %arg13[%c0_47, %c0_48, %c0_49] : memref<1x1x32xf32, #tpu.memory_space<vmem>>, vector<1x1x32xf32>
    %97 = vector.shape_cast %96 : vector<1x1x32xf32> to vector<1x32xf32>
    %cst_50 = arith.constant dense<0.000000e+00> : vector<8xf32>
    %98 = vector.multi_reduction <add>, %93, %cst_50 [1] : vector<8x32xf32> to vector<8xf32>
    %99 = vector.shape_cast %98 : vector<8xf32> to vector<8x1xf32>
    %cst_51 = arith.constant 3.200000e+01 : f32
    %100 = vector.broadcast %cst_51 : f32 to vector<8x1xf32>
    %101 = arith.divf %99, %100 : vector<8x1xf32>
    %102 = vector.broadcast %101 : vector<8x1xf32> to vector<8x32xf32>
    %103 = arith.subf %93, %102 : vector<8x32xf32>
    %104 = arith.mulf %103, %103 : vector<8x32xf32>
    %cst_52 = arith.constant dense<0.000000e+00> : vector<8xf32>
    %105 = vector.multi_reduction <add>, %104, %cst_52 [1] : vector<8x32xf32> to vector<8xf32>
    %106 = vector.shape_cast %105 : vector<8xf32> to vector<8x1xf32>
    %cst_53 = arith.constant 3.200000e+01 : f32
    %107 = vector.broadcast %cst_53 : f32 to vector<8x1xf32>
    %108 = arith.divf %106, %107 : vector<8x1xf32>
    %109 = vector.broadcast %101 : vector<8x1xf32> to vector<8x32xf32>
    %110 = arith.subf %93, %109 : vector<8x32xf32>
    %cst_54 = arith.constant 9.99999974E-6 : f32
    %111 = vector.broadcast %cst_54 : f32 to vector<8x1xf32>
    %112 = arith.addf %108, %111 : vector<8x1xf32>
    %113 = math.rsqrt %112 : vector<8x1xf32>
    %114 = vector.broadcast %113 : vector<8x1xf32> to vector<8x32xf32>
    %115 = arith.mulf %110, %114 : vector<8x32xf32>
    %116 = vector.broadcast %95 : vector<1x32xf32> to vector<8x32xf32>
    %117 = arith.mulf %115, %116 : vector<8x32xf32>
    %118 = vector.broadcast %97 : vector<1x32xf32> to vector<8x32xf32>
    %119 = arith.addf %117, %118 : vector<8x32xf32>
    %120 = arith.truncf %119 : vector<8x32xf32> to vector<8x32xbf16>
    %c0_55 = arith.constant 0 : index
    %c0_56 = arith.constant 0 : index
    %c0_57 = arith.constant 0 : index
    %121 = vector.load %arg14[%c0_55, %c0_56, %c0_57] : memref<1x32x64xbf16, #tpu.memory_space<vmem>>, vector<1x32x64xbf16>
    %122 = vector.shape_cast %121 : vector<1x32x64xbf16> to vector<32x64xbf16>
    %cst_58 = arith.constant dense<0.000000e+00> : vector<8x64xf32>
    %123 = tpu.matmul %120, %122, %cst_58 {dimension_numbers = #tpu.dot_dimension_numbers<[1], [0], [0], [1], [0, 0, 1, 1], [], []>} : vector<8x32xbf16>, vector<32x64xbf16>, vector<8x64xf32> -> vector<8x64xf32>
    %c0_59 = arith.constant 0 : index
    %c0_60 = arith.constant 0 : index
    %c0_61 = arith.constant 0 : index
    %124 = vector.load %arg15[%c0_59, %c0_60, %c0_61] : memref<1x1x64xf32, #tpu.memory_space<vmem>>, vector<1x1x64xf32>
    %125 = vector.shape_cast %124 : vector<1x1x64xf32> to vector<1x64xf32>
    %126 = vector.broadcast %125 : vector<1x64xf32> to vector<8x64xf32>
    %127 = arith.addf %123, %126 : vector<8x64xf32>
    %cst_62 = arith.constant 0.000000e+00 : f32
    %128 = vector.broadcast %cst_62 : f32 to vector<8x64xf32>
    %129 = arith.maximumf %127, %128 : vector<8x64xf32>
    %130 = arith.truncf %129 : vector<8x64xf32> to vector<8x64xbf16>
    %c0_63 = arith.constant 0 : index
    %c0_64 = arith.constant 0 : index
    %c0_65 = arith.constant 0 : index
    %131 = vector.load %arg16[%c0_63, %c0_64, %c0_65] : memref<1x64x32xbf16, #tpu.memory_space<vmem>>, vector<1x64x32xbf16>
    %132 = vector.shape_cast %131 : vector<1x64x32xbf16> to vector<64x32xbf16>
    %cst_66 = arith.constant dense<0.000000e+00> : vector<8x32xf32>
    %133 = tpu.matmul %130, %132, %cst_66 {dimension_numbers = #tpu.dot_dimension_numbers<[1], [0], [0], [1], [0, 0, 1, 1], [], []>} : vector<8x64xbf16>, vector<64x32xbf16>, vector<8x32xf32> -> vector<8x32xf32>
    %c0_67 = arith.constant 0 : index
    %c0_68 = arith.constant 0 : index
    %c0_69 = arith.constant 0 : index
    %134 = vector.load %arg17[%c0_67, %c0_68, %c0_69] : memref<1x1x32xf32, #tpu.memory_space<vmem>>, vector<1x1x32xf32>
    %135 = vector.shape_cast %134 : vector<1x1x32xf32> to vector<1x32xf32>
    %136 = vector.broadcast %135 : vector<1x32xf32> to vector<8x32xf32>
    %137 = arith.addf %133, %136 : vector<8x32xf32>
    %138 = arith.addf %119, %137 : vector<8x32xf32>
    %c0_70 = arith.constant 0 : index
    %c0_71 = arith.constant 0 : index
    %c0_72 = arith.constant 0 : index
    %139 = vector.load %arg18[%c0_70, %c0_71, %c0_72] : memref<1x1x32xf32, #tpu.memory_space<vmem>>, vector<1x1x32xf32>
    %140 = vector.shape_cast %139 : vector<1x1x32xf32> to vector<1x32xf32>
    %c0_73 = arith.constant 0 : index
    %c0_74 = arith.constant 0 : index
    %c0_75 = arith.constant 0 : index
    %141 = vector.load %arg19[%c0_73, %c0_74, %c0_75] : memref<1x1x32xf32, #tpu.memory_space<vmem>>, vector<1x1x32xf32>
    %142 = vector.shape_cast %141 : vector<1x1x32xf32> to vector<1x32xf32>
    %cst_76 = arith.constant dense<0.000000e+00> : vector<8xf32>
    %143 = vector.multi_reduction <add>, %138, %cst_76 [1] : vector<8x32xf32> to vector<8xf32>
    %144 = vector.shape_cast %143 : vector<8xf32> to vector<8x1xf32>
    %cst_77 = arith.constant 3.200000e+01 : f32
    %145 = vector.broadcast %cst_77 : f32 to vector<8x1xf32>
    %146 = arith.divf %144, %145 : vector<8x1xf32>
    %147 = vector.broadcast %146 : vector<8x1xf32> to vector<8x32xf32>
    %148 = arith.subf %138, %147 : vector<8x32xf32>
    %149 = arith.mulf %148, %148 : vector<8x32xf32>
    %cst_78 = arith.constant dense<0.000000e+00> : vector<8xf32>
    %150 = vector.multi_reduction <add>, %149, %cst_78 [1] : vector<8x32xf32> to vector<8xf32>
    %151 = vector.shape_cast %150 : vector<8xf32> to vector<8x1xf32>
    %cst_79 = arith.constant 3.200000e+01 : f32
    %152 = vector.broadcast %cst_79 : f32 to vector<8x1xf32>
    %153 = arith.divf %151, %152 : vector<8x1xf32>
    %154 = vector.broadcast %146 : vector<8x1xf32> to vector<8x32xf32>
    %155 = arith.subf %138, %154 : vector<8x32xf32>
    %cst_80 = arith.constant 9.99999974E-6 : f32
    %156 = vector.broadcast %cst_80 : f32 to vector<8x1xf32>
    %157 = arith.addf %153, %156 : vector<8x1xf32>
    %158 = math.rsqrt %157 : vector<8x1xf32>
    %159 = vector.broadcast %158 : vector<8x1xf32> to vector<8x32xf32>
    %160 = arith.mulf %155, %159 : vector<8x32xf32>
    %161 = vector.broadcast %140 : vector<1x32xf32> to vector<8x32xf32>
    %162 = arith.mulf %160, %161 : vector<8x32xf32>
    %163 = vector.broadcast %142 : vector<1x32xf32> to vector<8x32xf32>
    %164 = arith.addf %162, %163 : vector<8x32xf32>
    %c0_81 = arith.constant 0 : index
    %c0_82 = arith.constant 0 : index
    %c0_83 = arith.constant 0 : index
    %165 = vector.load %arg20[%c0_81, %c0_82, %c0_83] : memref<1x8x32xf32, #tpu.memory_space<vmem>>, vector<1x8x32xf32>
    %166 = vector.shape_cast %165 : vector<1x8x32xf32> to vector<8x32xf32>
    %167 = vector.shape_cast %164 : vector<8x32xf32> to vector<1x8x32xf32>
    tpu.vector_store %arg20[%c0_81, %c0_82, %c0_83], %167 {strides = array<i32>} : memref<1x8x32xf32, #tpu.memory_space<vmem>>, vector<1x8x32xf32>,
    return
  }
  func.func @transform_0(%arg0: i32, %arg1: i32, %arg2: memref<2xi32, #tpu.memory_space<smem>>) -> (i32, i32, i32) {
    %c0_i32 = arith.constant 0 : i32
    %c0_i32_0 = arith.constant 0 : i32
    %c0_i32_1 = arith.constant 0 : i32
    return %arg0, %c0_i32, %c0_i32_0 : i32, i32, i32
  }
  func.func @transform_1(%arg0: i32, %arg1: i32, %arg2: memref<2xi32, #tpu.memory_space<smem>>) -> (i32, i32, i32) {
    %c0_i32 = arith.constant 0 : i32
    %c0_i32_0 = arith.constant 0 : i32
    %c0_i32_1 = arith.constant 0 : i32
    return %arg1, %c0_i32, %c0_i32_0 : i32, i32, i32
  }
  func.func @transform_2(%arg0: i32, %arg1: i32, %arg2: memref<2xi32, #tpu.memory_space<smem>>) -> (i32, i32, i32) {
    %c0_i32 = arith.constant 0 : i32
    %c0_i32_0 = arith.constant 0 : i32
    %c0_i32_1 = arith.constant 0 : i32
    return %arg1, %c0_i32, %c0_i32_0 : i32, i32, i32
  }
  func.func @transform_3(%arg0: i32, %arg1: i32, %arg2: memref<2xi32, #tpu.memory_space<smem>>) -> (i32, i32, i32) {
    %c0_i32 = arith.constant 0 : i32
    %c0_i32_0 = arith.constant 0 : i32
    %c0_i32_1 = arith.constant 0 : i32
    return %arg1, %c0_i32, %c0_i32_0 : i32, i32, i32
  }
  func.func @transform_4(%arg0: i32, %arg1: i32, %arg2: memref<2xi32, #tpu.memory_space<smem>>) -> (i32, i32, i32) {
    %c0_i32 = arith.constant 0 : i32
    %c0_i32_0 = arith.constant 0 : i32
    %c0_i32_1 = arith.constant 0 : i32
    return %arg1, %c0_i32, %c0_i32_0 : i32, i32, i32
  }
  func.func @transform_5(%arg0: i32, %arg1: i32, %arg2: memref<2xi32, #tpu.memory_space<smem>>) -> (i32, i32, i32) {
    %c0_i32 = arith.constant 0 : i32
    %c0_i32_0 = arith.constant 0 : i32
    %c0_i32_1 = arith.constant 0 : i32
    return %arg1, %c0_i32, %c0_i32_0 : i32, i32, i32
  }
  func.func @transform_6(%arg0: i32, %arg1: i32, %arg2: memref<2xi32, #tpu.memory_space<smem>>) -> (i32, i32, i32) {
    %c0_i32 = arith.constant 0 : i32
    %c0_i32_0 = arith.constant 0 : i32
    %c0_i32_1 = arith.constant 0 : i32
    return %arg1, %c0_i32, %c0_i32_0 : i32, i32, i32
  }
  func.func @transform_7(%arg0: i32, %arg1: i32, %arg2: memref<2xi32, #tpu.memory_space<smem>>) -> (i32, i32, i32) {
    %c0_i32 = arith.constant 0 : i32
    %c0_i32_0 = arith.constant 0 : i32
    %c0_i32_1 = arith.constant 0 : i32
    return %arg1, %c0_i32, %c0_i32_0 : i32, i32, i32
  }
  func.func @transform_8(%arg0: i32, %arg1: i32, %arg2: memref<2xi32, #tpu.memory_space<smem>>) -> (i32, i32, i32) {
    %c0_i32 = arith.constant 0 : i32
    %c0_i32_0 = arith.constant 0 : i32
    %c0_i32_1 = arith.constant 0 : i32
    return %arg1, %c0_i32, %c0_i32_0 : i32, i32, i32
  }
  func.func @transform_9(%arg0: i32, %arg1: i32, %arg2: memref<2xi32, #tpu.memory_space<smem>>) -> (i32, i32, i32) {
    %c0_i32 = arith.constant 0 : i32
    %c0_i32_0 = arith.constant 0 : i32
    %c0_i32_1 = arith.constant 0 : i32
    return %arg1, %c0_i32, %c0_i32_0 : i32, i32, i32
  }
  func.func @transform_10(%arg0: i32, %arg1: i32, %arg2: memref<2xi32, #tpu.memory_space<smem>>) -> (i32, i32, i32) {
    %c0_i32 = arith.constant 0 : i32
    %c0_i32_0 = arith.constant 0 : i32
    %c0_i32_1 = arith.constant 0 : i32
    return %arg1, %c0_i32, %c0_i32_0 : i32, i32, i32
  }
  func.func @transform_11(%arg0: i32, %arg1: i32, %arg2: memref<2xi32, #tpu.memory_space<smem>>) -> (i32, i32, i32) {
    %c0_i32 = arith.constant 0 : i32
    %c0_i32_0 = arith.constant 0 : i32
    %c0_i32_1 = arith.constant 0 : i32
    return %arg1, %c0_i32, %c0_i32_0 : i32, i32, i32
  }
  func.func @transform_12(%arg0: i32, %arg1: i32, %arg2: memref<2xi32, #tpu.memory_space<smem>>) -> (i32, i32, i32) {
    %c0_i32 = arith.constant 0 : i32
    %c0_i32_0 = arith.constant 0 : i32
    %c0_i32_1 = arith.constant 0 : i32
    return %arg1, %c0_i32, %c0_i32_0 : i32, i32, i32
  }
  func.func @transform_13(%arg0: i32, %arg1: i32, %arg2: memref<2xi32, #tpu.memory_space<smem>>) -> (i32, i32, i32) {
    %c0_i32 = arith.constant 0 : i32
    %c0_i32_0 = arith.constant 0 : i32
    %c0_i32_1 = arith.constant 0 : i32
    return %arg1, %c0_i32, %c0_i32_0 : i32, i32, i32
  }
  func.func @transform_14(%arg0: i32, %arg1: i32, %arg2: memref<2xi32, #tpu.memory_space<smem>>) -> (i32, i32, i32) {
    %c0_i32 = arith.constant 0 : i32
    %c0_i32_0 = arith.constant 0 : i32
    %c0_i32_1 = arith.constant 0 : i32
    return %arg1, %c0_i32, %c0_i32_0 : i32, i32, i32
  }
  func.func @transform_15(%arg0: i32, %arg1: i32, %arg2: memref<2xi32, #tpu.memory_space<smem>>) -> (i32, i32, i32) {
    %c0_i32 = arith.constant 0 : i32
    %c0_i32_0 = arith.constant 0 : i32
    %c0_i32_1 = arith.constant 0 : i32
    return %arg1, %c0_i32, %c0_i32_0 : i32, i32, i32
  }
  func.func @transform_16(%arg0: i32, %arg1: i32, %arg2: memref<2xi32, #tpu.memory_space<smem>>) -> (i32, i32, i32) {
    %c0_i32 = arith.constant 0 : i32
    %c0_i32_0 = arith.constant 0 : i32
    %c0_i32_1 = arith.constant 0 : i32
    return %arg1, %c0_i32, %c0_i32_0 : i32, i32, i32
  }
  func.func @transform_17(%arg0: i32, %arg1: i32, %arg2: memref<2xi32, #tpu.memory_space<smem>>) -> (i32, i32, i32) {
    %c0_i32 = arith.constant 0 : i32
    %c0_i32_0 = arith.constant 0 : i32
    %c0_i32_1 = arith.constant 0 : i32
    return %arg0, %c0_i32, %c0_i32_0 : i32, i32, i32
  }
}

</mosaic_0001>

<bundles_post_ra>
// kernel: tpu_custom_call.1
= control target key start
LH: loop header
LB: loop body
LE: loop exit
PB: predicated region body
PF: predicated region fallthrough
CT: control target
= control target key end

     0   :  { %s3161_s0 = inlined_call_operand.hbm [shape: s32[2], index: 0, kind: input, shape index: {}]   ;;  %s3162_s1 = inlined_call_operand.hbm [shape: f32[2,8,32], index: 1, kind: input, shape index: {}]   ;;  %s3163_s2 = inlined_call_operand.vmem [shape: bf16[2,32,32], index: 2, kind: input, shape index: {}]   ;;  %s3164_s3 = inlined_call_operand.vmem [shape: f32[2,1,32], index: 3, kind: input, shape index: {}]   ;;  %s3165_s4 = inlined_call_operand.vmem [shape: bf16[2,32,32], index: 4, kind: input, shape index: {}]   ;;  %s3166_s5 = inlined_call_operand.vmem [shape: f32[2,1,32], index: 5, kind: input, shape index: {}]   ;;  %s3167_s6 = inlined_call_operand.vmem [shape: bf16[2,32,32], index: 6, kind: input, shape index: {}]   ;;  %s3168_s7 = inlined_call_operand.vmem [shape: f32[2,1,32], index: 7, kind: input, shape index: {}]   ;;  %s3169_s8 = inlined_call_operand.hbm [shape: bf16[2,32,32], index: 8, kind: input, shape index: {}]   ;;  %s3170_s9 = inlined_call_operand.vmem [shape: f32[2,1,32], index: 9, kind: input, shape index: {}]   ;;  %s3171_s10 = inlined_call_operand.vmem [shape: f32[2,1,32], index: 10, kind: input, shape index: {}]   ;;  %s3172_s11 = inlined_call_operand.vmem [shape: f32[2,1,32], index: 11, kind: input, shape index: {}]   ;;  %s3173_s12 = inlined_call_operand.hbm [shape: bf16[2,32,64], index: 12, kind: input, shape index: {}]   ;;  %s3174_s13 = inlined_call_operand.vmem [shape: f32[2,1,64], index: 13, kind: input, shape index: {}]   ;;  %s3175_s14 = inlined_call_operand.vmem [shape: bf16[2,64,32], index: 14, kind: input, shape index: {}]   ;;  %s3176_s15 = inlined_call_operand.vmem [shape: f32[2,1,32], index: 15, kind: input, shape index: {}]   ;;  %s3177_s16 = inlined_call_operand.vmem [shape: f32[2,1,32], index: 16, kind: input, shape index: {}]   ;;  %s3178_s17 = inlined_call_operand.vmem [shape: f32[2,1,32], index: 17, kind: input, shape index: {}]   ;;  %s3179_s18 = inlined_call_operand.hbm [shape: f32[2,8,32], index: 18, kind: output, shape index: {}]  }
   0x1   :  { %3209 = sst [smem:[#allocation30_spill]] %s3161_s0 }
   0x2   :  { %3210 = sst [smem:[#allocation31_spill]] %s3162_s1  ;;  %s3228_s29 = sld [smem:[#allocation30_spill]] }
   0x3   :  { %3211 = sst [smem:[#allocation32_spill]] %s3163_s2 }
   0x4   :  { %3212 = sst [smem:[#allocation33_spill]] %s3164_s3 }
   0x5   :  { %3213 = sst [smem:[#allocation34_spill]] %s3165_s4 }
   0x6   :  { %3214 = sst [smem:[#allocation35_spill]] %s3166_s5 }
   0x7   :  { %3215 = sst [smem:[#allocation36_spill]] %s3167_s6 }
   0x8   :  { %3216 = sst [smem:[#allocation37_spill]] %s3168_s7 }
   0x9   :  { %3217 = sst [smem:[#allocation38_spill]] %s3169_s8 }
   0xa   :  { %3218 = sst [smem:[#allocation39_spill]] %s3170_s9 }
   0xb   :  { %3219 = sst [smem:[#allocation40_spill]] %s3171_s10 }
   0xc   :  { %3220 = sst [smem:[#allocation41_spill]] %s3172_s11  ;;  %s2239_s11 = scalar_lea.hbm %s3228_s29, 16 }
   0xd   :  { %3221 = sst [smem:[#allocation42_spill]] %s3173_s12  ;;  %p2240_p0 = scmp.ne.s32.totalorder %s3228_s29, %s2239_s11 }
   0xe   :  { %3222 = sst [smem:[#allocation43_spill]] %s3174_s13  ;;  %p2243_p1 = scmp.lt.u32.totalorder %s2239_s11, %s3228_s29 }
   0xf   :  { %3223 = sst [smem:[#allocation44_spill]] %s3175_s14 }
  0x10   :  { %3224 = sst [smem:[#allocation45_spill]] %s3176_s15  ;;  %p2245_p2 = pnand %p2243_p1, %p2240_p0 }
  0x11   :  { %3225 = sst [smem:[#allocation46_spill]] %s3177_s16 }
  0x12   :  { %3226 = sst [smem:[#allocation47_spill]] %s3178_s17 }
  0x13   :  { %3227 = sst [smem:[#allocation48_spill]] %s3179_s18 }
  0x14   :  { %2248 = shalt.err (!%p2245_p2)  }
  0x15   :  { %s2469_s20 = smov [#allocation3]  }
  0x16   :  { %24 = dma.hbm_to_smem %s3228_s29, 16, %s2469_s20, [#allocation2] }
  0x17   :  { %2411 = dma.done.wait [#allocation2], 16 }
  0x18   :  { %2412 = vsyncadd [#allocation2], 4294967280 }
  0x19   :  { %26 = sfence }
  0x1a   :  { %27 = vsyncpa [#allocation5], 0 }
  0x1b   :  { %29 = vsyncpa [#allocation5 + $0x1], 0 }
  0x1c   :  { %30 = vsyncpa [#allocation8], 0 }
  0x1d   :  { %32 = vsyncpa [#allocation8 + $0x1], 0 }
  0x1e   :  { %33 = vsyncpa [#allocation6], 0 }
  0x1f   :  { %35 = vsyncpa [#allocation6 + $0x1], 0  ;;  %s2586_s2 = smov 0   ;;  %s2588_s23 = smov 0  }
  0x20   :  { %s2590_s11 = smov 0   ;;  %s2592_s24 = smov 0  }
  0x21   :  { %s2594_s25 = smov 0   ;;  %s2596_s26 = smov 0  }
  0x22   :  { %s2598_s27 = smov 0   ;;  %s2600_s28 = smov 0  }
  0x23   :  { %s2602_s29 = smov 0   ;;  %s2604_s30 = smov 0  }
  0x24   :  { %s2606_s0 = smov 0  }
  0x25 LB: > { %3229 = sst [smem:[#allocation15_spill]] %s2431_s23  ;;  %s50_s19 = sadd.s32 1, %s2459_s29  ;;  %s2467_s0 = sphi %s2606_s0, %s41_s0   ;;  %s2463_s30 = sphi %s2604_s30, %s3315_s30   ;;  %s2459_s29 = sphi %s2602_s29, %s3314_s29   ;;  %s2455_s28 = sphi %s2600_s28, %s3313_s28   ;;  %s2451_s27 = sphi %s2598_s27, %s3312_s27   ;;  %s2447_s26 = sphi %s2596_s26, %s3311_s26   ;;  %s2443_s25 = sphi %s2594_s25, %s3310_s25   ;;  %s2439_s24 = sphi %s2592_s24, %s3309_s24   ;;  %s2435_s11 = sphi %s2590_s11, %s3308_s11   ;;  %s2431_s23 = sphi %s2588_s23, %s3307_s23   ;;  %s2427_s2 = sphi %s2586_s2, %s3306_s2  }
  0x26   : > { %3230 = sst [smem:[#allocation16_spill]] %s2435_s11  ;;  %p3187_p3 = scmp.eq.s32.totalorder %s2467_s0, 0 }
  0x27   : > { %3231 = sst [smem:[#allocation17_spill]] %s2439_s24  ;;  %p2643_p4 = scmp.ge.s32.totalorder %s50_s19, 2 }
  0x28   : > { %3232 = sst [smem:[#allocation18_spill]] %s2443_s25  ;;  %s242_s20 = sadd.s32 1, %s2435_s11 }
  0x29   : > { %3233 = sst [smem:[#allocation19_spill]] %s2447_s26  ;;  %p249_p5 = scmp.ne.s32.totalorder %s2435_s11, %s2431_s23 }
  0x2a   : > { %3234 = sst [smem:[#allocation20_spill]] %s2455_s28  ;;  %s3317_s19 = smov (%p2643_p4, %s50_s19), 0 }
  0x2b   : > { %3235 = sst [smem:[#allocation21_spill]] %s2459_s29  ;;  %p251_p6 = por %p249_p5, %p3187_p3 }
  0x2c   : > { %3236 = sst [smem:[#allocation22_spill]] %s2463_s30  ;;  %s239_s21 = ssub.s32 %s2459_s29, %s3317_s19 }
  0x2d   : > { %3237 = sst [smem:[#allocation23_spill]] %s2467_s0  ;;  %p3186_p7 = scmp.lt.s32.totalorder %s2467_s0, 4 }
  0x2e   : > { %3239 = sst [smem:[#allocation24_spill]] %s3317_s19  ;;  %p240_p8 = scmp.eq.s32.totalorder %s239_s21, 0 }
  0x2f   : > { %s599_s22 = sand.u32 1, %s2467_s0   ;;  %s601_s18 = sand.u32 1, %s2435_s11  }
  0x30   : > { %s2662_s17 = scalar_select %p240_p8, %s2435_s11, %s242_s20  }
  0x31   : > { %s2664_s16 = sshll.u32 %s601_s18, 4  ;;  %s3184_s15 = sshll.u32 %s2459_s29, 8 }
  0x32   : > { %3240 = sst [smem:[#allocation25_spill]] %s2662_s17  ;;  %s3241_s8 = sld [smem:[#allocation38_spill]] }
  0x33   : > { %s603_s19 = scalar_lea.vmem [#allocation7], %s2664_s16  ;;  %p2677_p9 = pnand %p3186_p7, %p251_p6 }
  0x34   : > { %s610_s21 = sshll.u32 %s603_s19, 4  ;;  %s2683_s18 = scalar_lea.sflag [#allocation8], %s599_s22  ;;  %s2681_s21 = int_to_ptr.vmem [resolvable:$true] %s610_s21 }
  0x35   : > { %p3188_p11 = pneg %p2677_p9 }
  0x38   : > { %s2672_s10 = scalar_lea.hbm %s3241_s8, %s3184_s15  ;;  %s2254_s15 = scalar_lea.hbm %s3241_s8, 512 }
  0x39   : > { %s2249_s13 = scalar_lea.hbm %s2672_s10, 256  ;;  %p2255_p0 = scmp.lt.u32.totalorder %s2672_s10, %s3241_s8 }
  0x3a   : > { %p2250_p10 = scmp.ne.s32.totalorder %s2672_s10, %s2249_s13  ;;  %p2256_p1 = scmp.lt.u32.totalorder %s2254_s15, %s2249_s13 }
  0x3b   : > { %p2258_p5 = scmp.lt.u32.totalorder %s2249_s13, %s2672_s10 }
  0x3c   : > { %p2252_p12 = pnand %p3188_p11, %p2250_p10  ;;  %p2257_p2 = por %p2256_p1, %p2255_p0 }
  0x3e   : > { %p2253_p13 = pneg %p2252_p12  ;;  %p2259_p6 = por %p2258_p5, %p2257_p2 }
  0x40   : > { %p2260_p8 = pnand %p2259_p6, %p2253_p13 }
  0x42   : > { %2263 = shalt.err (!%p2260_p8)
}
  0x43   : > { %s2264_s22 = scalar_lea.vmem %s2681_s21, 256  ;;  %s2470_s14 = smov [#allocation7]  }
  0x44   : > { %p2265_p10 = scmp.ne.s32.totalorder %s2681_s21, %s2264_s22  ;;  %s2269_s19 = sshll.u32 %s2470_s14, 4  ;;  %s2270_s19 = int_to_ptr.vmem [resolvable:$false] %s2269_s19 }
  0x45   : > { %s2271_s17 = scalar_lea.vmem %s2270_s19, 512  ;;  %p2272_p3 = scmp.lt.s32.totalorder %s2681_s21, %s2270_s19 }
  0x46   : > { %p2267_p12 = pnand %p2265_p10, %p3188_p11  ;;  %p2273_p0 = scmp.lt.s32.totalorder %s2271_s17, %s2264_s22 }
  0x48   : > { %p2268_p7 = pneg %p2267_p12  ;;  %p2274_p1 = por %p2273_p0, %p2272_p3 }
  0x4a   : > { %p2275_p2 = pnand %p2274_p1, %p2268_p7 }
  0x4c   : > { %2278 = shalt.err (!%p2275_p2)
}
  0x4d   : > { %s3189_s15 = smov 64   ;;  %s3190_s11 = smov 4  }
  0x4e   : > { %2109 = dma.hbm_to_vmem [thread:$0]  (!%p2677_p9), %s2672_s10, 256, %s2681_s21, %s2683_s18, %s3189_s15, %s3189_s15, %s3190_s11  }
  0x4f   : > { %p255_p3 = scmp.ne.s32.totalorder %s2431_s23, %s2427_s2  ;;  %s3243_s13 = sshll.u32 %s2459_s29, 8 }
  0x50   : > { %s3244_s12 = sld [smem:[#allocation42_spill]]  ;;  %p1927_p7 = scmp.ge.s32.totalorder %s2467_s0, 1 }
  0x51   : > { %s642_s17 = scalar_lea.vmem [#allocation9], %s2664_s16  ;;  %p689_p13 = scmp.lt.s32.totalorder %s2467_s0, 5 }
  0x52   : > { %s649_s8 = sshll.u32 %s642_s17, 4  ;;  %s2731_s10 = sadd.s32 4294967295, %s2467_s0   ;;  %s2798_s8 = int_to_ptr.vmem [resolvable:$true] %s649_s8 }
  0x53   : > { %p2726_p5 = pnand %p1927_p7, %p689_p13  ;;  %s1916_s21 = sadd.s32 4294967294, %s2467_s0  }
  0x54   : > { %s60_s16 = sadd.s32 1, %s2447_s26  ;;  %p67_p6 = scmp.ne.s32.totalorder %s2447_s26, %s2443_s25 }
  0x55   : > { %s3245_s9 = scalar_select %p2726_p5, 1, 0 }
  0x56   : > { %s2721_s19 = scalar_lea.hbm %s3244_s12, %s3243_s13  ;;  %s53_s13 = sadd.s32 1, %s2463_s30 }
  0x57   : > { %s3319_s13 = smov (!%p2643_p4, %s53_s13), %s2463_s30  ;;  %p73_p10 = scmp.ne.s32.totalorder %s2443_s25, %s2439_s24 }
  0x58   : > { %p55_p8 = scmp.ge.s32.totalorder %s3319_s13, 2  ;;  %p3246_p12 = scmp.eq.s32.totalorder %s2467_s0, 0 }
  0x59   : > { %p74_p1 = scmp.eq.s32.totalorder %s2731_s10, 0  ;;  %p513_p7 = scmp.eq.s32.totalorder %s2731_s10, 3 }
  0x5a   : > { %p2745_p0 = por %p3246_p12, %p67_p6  ;;  %s3321_s13 = smov (%p55_p8, %s3319_s13), 0 }
  0x5b   : > { %3248 = sst [smem:[#allocation26_spill]] %s3321_s13  ;;  %p2755_p4 = por %p74_p1, %p73_p10 }
  0x5c   : > { %p2762_p2 = por %p255_p3, %p74_p1  ;;  %s57_s17 = ssub.s32 %s2463_s30, %s3321_s13 }
  0x5d   : > { %s3249_s1 = scalar_select %p2755_p4, 1, 0 }
  0x5e   : > { %s3250_s14 = scalar_select %p2762_p2, 1, 0 }
  0x5f   : > { %p58_p13 = scmp.eq.s32.totalorder %s57_s17, 0  ;;  %p519_p12 = scmp.eq.s32.totalorder %s1916_s21, 3 }
  0x60   : > { %p2769_p11 = por %p513_p7, %p67_p6  ;;  %s539_s11 = sand.u32 1, %s2447_s26  }
  0x61   : > { %s2775_s29 = scalar_select %p58_p13, %s2447_s26, %s60_s16  }
  0x62   : > { %s3251_s15 = scalar_select %p2769_p11, 1, 0 }
  0x63   : > { %3253 = sst [smem:[#allocation28_spill]] %s2775_s29  ;;  %p2780_p8 = por %p519_p12, %p73_p10 }
  0x64   : > { %3252 = sst [smem:[#allocation27_spill]] %s3251_s15  ;;  %s1919_s2 = sshll.u32 %s539_s11, 3 }
  0x65   : > { %s3254_s7 = scalar_select %p2780_p8, 1, 0 }
  0x66   : > { %s1920_s6 = sshll.u32 %s2463_s30, 7  ;;  %s3256_s13 = sld [smem:[#allocation31_spill]] }
  0x67   : > { %3255 = sst [smem:[#allocation29_spill]] %s3254_s7  ;;  %s543_s21 = scalar_lea.vmem [#allocation4], %s1919_s2 }
  0x68   : > { %s550_s17 = sshll.u32 %s543_s21, 4  ;;  %p3257_p3 = scmp.lt.s32.totalorder %s2467_s0, 4  ;;  %s2800_s17 = int_to_ptr.vmem [resolvable:$true] %s550_s17 }
  0x69   : > { %s540_s4 = scalar_lea.sflag [#allocation5], %s539_s11 }
  0x6a   : > { %p2794_p6 = pnand %p3257_p3, %p2745_p0 }
  0x6c   : > { %s2788_s3 = scalar_lea.hbm %s3256_s13, %s1920_s6  ;;  %p2281_p1 = pneg %p2794_p6 }
  0x6d   : > { %s2279_s5 = scalar_lea.hbm %s2788_s3, 128  ;;  %s2284_s2 = scalar_lea.hbm %s3256_s13, 256 }
  0x6e   : > { %p2280_p10 = scmp.ne.s32.totalorder %s2788_s3, %s2279_s5  ;;  %p2285_p0 = scmp.lt.u32.totalorder %s2788_s3, %s3256_s13 }
  0x6f   : > { %p2286_p12 = scmp.lt.u32.totalorder %s2284_s2, %s2279_s5  ;;  %p2288_p8 = scmp.lt.u32.totalorder %s2279_s5, %s2788_s3 }
  0x70   : > { %p2282_p7 = pnand %p2281_p1, %p2280_p10 }
  0x71   : > { %p2287_p3 = por %p2286_p12, %p2285_p0 }
  0x72   : > { %p2283_p13 = pneg %p2282_p7 }
  0x73   : > { %p2289_p11 = por %p2288_p8, %p2287_p3 }
  0x75   : > { %p2290_p2 = pnand %p2289_p11, %p2283_p13 }
  0x77   : > { %2293 = shalt.err (!%p2290_p2)
}
  0x78   : > { %s2294_s11 = scalar_lea.vmem %s2800_s17, 128  ;;  %s2473_s6 = smov [#allocation4]  }
  0x79   : > { %p2295_p10 = scmp.ne.s32.totalorder %s2800_s17, %s2294_s11  ;;  %s2299_s22 = sshll.u32 %s2473_s6, 4  ;;  %s2300_s22 = int_to_ptr.vmem [resolvable:$false] %s2299_s22 }
  0x7a   : > { %s2301_s30 = scalar_lea.vmem %s2300_s22, 256  ;;  %p2302_p5 = scmp.lt.s32.totalorder %s2800_s17, %s2300_s22 }
  0x7b   : > { %p2297_p7 = pnand %p2295_p10, %p2281_p1  ;;  %p2303_p0 = scmp.lt.s32.totalorder %s2301_s30, %s2294_s11 }
  0x7d   : > { %p2298_p4 = pneg %p2297_p7  ;;  %p2304_p12 = por %p2303_p0, %p2302_p5 }
  0x7f   : > { %p2305_p8 = pnand %p2304_p12, %p2298_p4 }
  0x81   : > { %2308 = shalt.err (!%p2305_p8)
}
  0x82   : > { %2106 = dma.hbm_to_vmem [thread:$0]  (!%p2794_p6), %s2788_s3, 128, %s2800_s17, %s540_s4  }
  0x83   : > { %s2309_s5 = scalar_lea.hbm %s2721_s19, 256  ;;  %p3259_p2 = pneg %p2677_p9 }
  0x84   : > { %p2310_p11 = scmp.ne.s32.totalorder %s2721_s19, %s2309_s5  ;;  %s2314_s11 = scalar_lea.hbm %s3244_s12, 512 }
  0x85   : > { %p2315_p5 = scmp.lt.u32.totalorder %s2721_s19, %s3244_s12  ;;  %p2316_p4 = scmp.lt.u32.totalorder %s2314_s11, %s2309_s5 }
  0x86   : > { %p2312_p1 = pnand %p2310_p11, %p3259_p2  ;;  %p2318_p10 = scmp.lt.u32.totalorder %s2309_s5, %s2721_s19 }
  0x87   : > { %p2317_p3 = por %p2316_p4, %p2315_p5 }
  0x88   : > { %p2313_p13 = pneg %p2312_p1 }
  0x89   : > { %p2319_p7 = por %p2318_p10, %p2317_p3 }
  0x8b   : > { %p2320_p0 = pnand %p2319_p7, %p2313_p13 }
  0x8d   : > { %2323 = shalt.err (!%p2320_p0)
}
  0x8e   : > { %s2324_s3 = scalar_lea.vmem %s2798_s8, 256  ;;  %p3260_p12 = pmov %p3259_p2 }
  0x8f   : > { %p2325_p6 = scmp.ne.s32.totalorder %s2798_s8, %s2324_s3  ;;  %s2474_s17 = smov [#allocation9]  }
  0x90   : > { %s2329_s4 = sshll.u32 %s2474_s17, 4  ;;  %s2330_s4 = int_to_ptr.vmem [resolvable:$false] %s2329_s4 }
  0x91   : > { %p2327_p8 = pnand %p2325_p6, %p3260_p12  ;;  %s2331_s22 = scalar_lea.vmem %s2330_s4, 512 }
  0x92   : > { %p2332_p2 = scmp.lt.s32.totalorder %s2798_s8, %s2330_s4  ;;  %p2333_p1 = scmp.lt.s32.totalorder %s2331_s22, %s2324_s3 }
  0x93   : > { %p2328_p11 = pneg %p2327_p8 }
  0x94   : > { %p2334_p5 = por %p2333_p1, %p2332_p2 }
  0x96   : > { %p2335_p4 = pnand %p2334_p5, %p2328_p11 }
  0x98   : > { %2338 = shalt.err (!%p2335_p4)
}
  0x99   : > { %s3261_s30 = smov 4   ;;  %s3262_s5 = smov 64  }
  0x9a   : > { %2112 = dma.hbm_to_vmem [thread:$0]  (!%p2677_p9), %s2721_s19, 256, %s2798_s8, %s2683_s18, %s3262_s5, %s3262_s5, %s3261_s30  }
  0x9b   : > { %p3263_p13 = scmp.ne.s32.totalorder %s3245_s9, 0 }
  0x9c   : > { %s2857_s2 = sand.u32 (!%p3263_p13), 1, %s2443_s25   ;;  %p3264_p3 = scmp.ne.s32.totalorder (!%p3263_p13), %s3249_s1, 0 }
  0x9d   : > { %693 = sbr.rel (%p3263_p13) target bundleno = 2584 (0xa18), region = 88  ;;  %s3197_s21 = sshll.u32 (!%p3263_p13), %s2857_s2, 3 }
  0x9e   : > { %s696_s11 = scalar_lea.sflag (!%p3263_p13), [#allocation5], %s2857_s2  ;;  %s2863_s20 = scalar_lea.vmem (!%p3263_p13), [#allocation4], %s3197_s21 }
  0xa4   : > { %2414 = dma.done.wait (%p3264_p3), %s696_s11, 128  }
  0xa5   : > { %2416 = vsyncadd (%p3264_p3), %s696_s11, 4294967168  ;;  %s704_s8 = sand.u32 1, %s2731_s10   ;;  %s706_s9 = sand.u32 1, %s2431_s23  }
  0xa6   : > { %s2871_s18 = sshll.u32 %s706_s9, 4  ;;  %s705_s19 = scalar_lea.sflag [#allocation8], %s704_s8 }
  0xa7   : > { %p3265_p9 = scmp.ne.s32.totalorder %s3250_s14, 0 }
  0xa9   : > { %2418 = dma.done.wait (%p3265_p9), %s705_s19, 512  }
  0xaa   : > { %2420 = vsyncadd (%p3265_p9), %s705_s19, 4294966784  ;;  %s2879_s1 = sld [smem:[#allocation3 + %s2455_s28]]  ;;  %p828_p10 = scmp.lt.s32.totalorder %s2451_s27, 1 }
  0xab   : > { %s3267_s5 = sld [smem:[#allocation32_spill]]  ;;  %s3268_s19 = sld [smem:[#allocation34_spill]] }
  0xac   : > { %s2883_s16 = scalar_select %p828_p10, %s2451_s27, 1 }
  0xad   : > { %s3270_s23 = sld [smem:[#allocation36_spill]]  ;;  %s3271_s4 = sld [smem:[#allocation37_spill]] }
  0xae   : > { %s1982_s10 = sshll.u32 %s2883_s16, 4  ;;  %s3279_s13 = sld [smem:[#allocation47_spill]] }
  0xaf   : > { %s717_s29 = scalar_lea.vmem [#allocation9], %s2871_s18  ;;  %s3280_s25 = sshll.u32 %s2857_s2, 3 }
  0xb0   : > { %p1940_p7 = scmp.ne.s32.totalorder %s2451_s27, 0 }
  0xb1   : > { %s832_s11 = scalar_lea.vmem %s3267_s5, %s1982_s10  ;;  %s2896_s6 = scalar_lea.vmem %s3268_s19, %s1982_s10  ;;  %v884_v0 = vld [vmem:[%s2863_s20] sm:$0xff] (!%p1940_p7)  ;;  %vm885_vm0 = vcmask (!%p1940_p7), 261120  }
  0xb2   : > { %s3277_s5 = sld [smem:[#allocation45_spill]]  ;;  %s3278_s19 = sld [smem:[#allocation46_spill]] }
  0xb3   : > { %s2905_s14 = scalar_lea.vmem %s3270_s23, %s1982_s10  ;;  %s851_s22 = scalar_lea.vmem %s3271_s4, %s2883_s16 }
  0xb4   : > { %s3275_s23 = sld [smem:[#allocation43_spill]]  ;;  %s1985_s10 = sshll.u32 %s2883_s16, 5 }
  0xb5   : > { %s3276_s4 = sld [smem:[#allocation44_spill]]  ;;  %s877_s21 = scalar_lea.vmem %s3279_s13, %s2883_s16 }
  0xb6   : > { %883 = sbr.rel (%p1940_p7) target bundleno = 189 (0xbd), region = 104 }
  0xb8   : > { %s871_s24 = scalar_lea.vmem %s3277_s5, %s2883_s16  ;;  %s874_s0 = scalar_lea.vmem %s3278_s19, %s2883_s16 }
  0xba   : > { %s863_s26 = scalar_lea.vmem %s3275_s23, %s2883_s16  ;;  %s2948_s23 = scalar_lea.vmem [#allocation10], %s3280_s25 }
  0xbb   : > { %s2931_s17 = scalar_lea.vmem %s3276_s4, %s1985_s10  ;;  %886 = vst.msk [vmem:[%s2948_s23] sm:$0xff] (!%p1940_p7), %vm885_vm0, %v884_v0 }
  0xbd PF: > { %v2213_v1 = vld [vmem:[%s832_s11] sm:$0xff]   ;;  %v2475_v2 = vmov 0.0   ;;  %v2214_v3 = vld [vmem:[%s832_s11 + $0x8] sm:$0xff]   ;;  %vm2476_vm1 = vmmov 0   ;;  %vm912_vm2 = vcmask 261120   ;;  %s3281_s20 = sld [smem:[#allocation35_spill]]  ;;  %v1082_v28 = vlaneseq }
  0xbe   : > { %2015 = vmatprep.subr.bf16.mxu1 %v2475_v2  ;;  %2031 = vmatprep.subr.bf16.mxu0 %v2475_v2  ;;  %v2215_v5 = vld [vmem:[%s2896_s6] sm:$0xff]   ;;  %v2216_v7 = vld [vmem:[%s2896_s6 + $0x8] sm:$0xff]   ;;  %s3283_s3 = sld [smem:[#allocation33_spill]]  ;;  %vm1093_vm3 = vcmask 130048   ;;  %s2477_s30 = smov 112   ;;  %v1084_v30 = vstv %s2879_s1  ;;  %vm1142_vm5 = vcmask 64512  }
  0xbf   : > { %2016 = vmatpush3.bf16.msra.mxu1 %v2213_v1  ;;  %2019 = vmatprep.mubr.msk.bf16.mxu1 %vm2476_vm1, %v2475_v2  ;;  %v2217_v23 = vld [vmem:[%s2905_s14] sm:$0xff]   ;;  %v2218_v24 = vld [vmem:[%s2905_s14 + $0x8] sm:$0xff]   ;;  %v1083_v29 = vand.u32 127, %v1082_v28  ;;  %vm1158_vm6 = vcmask 1043456   ;;  %s3288_s19 = sld [smem:[#allocation39_spill]]  ;;  %s3290_s13 = sld [smem:[#allocation40_spill]] }
  0xc0   : > { %2017 = vmatprep.subr.bf16.mxu1 %v2475_v2  ;;  %2035 = vmatprep.mubr.msk.bf16.mxu0 %vm2476_vm1, %v2475_v2  ;;  %v1949_v48 = vld [vmem:[%s851_s22] ss:$0 sm:$0xff]  ;;  %s3286_s22 = scalar_lea.vmem [#allocation7], %s2871_s18  ;;  %s3292_s28 = sld [smem:[#allocation41_spill]]  ;;  %vm1564_vm7 = vcmask 523264  }
  0xc1   : > { %2032 = vmatpush3.bf16.msra.mxu0 %v2217_v23  ;;  %vm1085_vm4 = vcmp.lt.s32.totalorder %v1083_v29, %v1084_v30  ;;  %s3287_s5 = smov %s3286_s22  ;;  %s1653_s9 = sshll.u32 %s2948_s23, 4  ;;  %s3098_s9 = int_to_ptr.vmem [resolvable:$true] %s1653_s9 }
  0xc2   : > { %v2958_v4 = vld [vmem:[%s2948_s23] sm:$0xff]  ;;  %2033 = vmatprep.subr.bf16.mxu0 %v2475_v2  ;;  %s3300_s18 = sld [smem:[#allocation48_spill]] }
  0xc3   : > { %v888_v6 = vpack.c.bf16 %v2958_v4, %v2958_v4  ;;  %2018 = vmatpush3.bf16.msra.mxu1 %v2214_v3  ;;  %s3282_s6 = scalar_lea.vmem %s3281_s20, %s2883_s16 }
  0xc4   : > { %2023 = vmatprep.subr.bf16.mxu1 %v2475_v2  ;;  %v1945_v12 = vld [vmem:[%s3282_s6] ss:$0 sm:$0xff]  ;;  %s3284_s4 = scalar_lea.vmem %s3283_s3, %s2883_s16 }
  0xc5   : > { %v1941_v13 = vld [vmem:[%s3284_s4] ss:$0 sm:$0xff]  ;;  %2034 = vmatpush3.bf16.msra.mxu0 %v2218_v24  ;;  %s3289_s15 = scalar_lea.vmem %s3288_s19, %s2883_s16 }
  0xc6   : > { %2020 = vmatmul.mubr.msk.bf16.vlgmr.msra.gmra.mrb[0].mxu1 %vm912_vm2, %v888_v6  ;;  %2045 = vmatprep.subr.bf16.mxu0 %v2475_v2  ;;  %v1961_v28 = vld [vmem:[%s3289_s15] ss:$0 sm:$0xff]  ;;  %s3293_s20 = scalar_lea.vmem %s3292_s28, %s2883_s16 }
  0xc7   : > { %2024 = vmatpush3.bf16.msra.mxu1 %v2215_v5  ;;  %2027 = vmatprep.mubr.msk.bf16.mxu1 %vm2476_vm1, %v2475_v2  ;;  %v2220_v5 = vld [vmem:[%s3286_s22 + $0x8] sm:$0xff]  }
  0xc8   : > { %2025 = vmatprep.subr.bf16.mxu1 %v2475_v2  ;;  %2036 = vmatmul.mubr.msk.bf16.vlgmr.msra.gmra.mrb[0].mxu0 %vm912_vm2, %v888_v6 }
  0xc9   : > { %2047 = vmatprep.mubr.msk.bf16.mxu0 %vm2476_vm1, %v2475_v2 }
  0xcb   : > { %2026 = vmatpush3.bf16.msra.mxu1 %v2216_v7 }
  0xcc   : > { %2039 = vmatprep.subr.bf16.mxu1 %v2475_v2 }
  0xce   : > { %2028 = vmatmul.mubr.msk.bf16.vlgmr.msra.gmra.mrb[4].mxu1 %vm912_vm2, %v888_v6 }
  0xcf   : > { %2041 = vmatprep.mubr.msk.bf16.mxu1 %vm2476_vm1, %v2475_v2 }
 0x199   : > { %v950_v8 = vpop.f32.mrb[0].mxu1 }
 0x19a   : > { %v2021_v9 = vpop.f32.mrb[1].mxu1  ;;  %v951_v18 = vadd.f32 %v1941_v13, %v950_v8 }
 0x19b   : > { %v953_v10 = vpop.f32.mrb[2].mxu1  ;;  %v1076_v49 = vpop.f32.mrb[0].mxu0 }
 0x19c   : > { %v2022_v11 = vpop.f32.mrb[3].mxu1  ;;  %v1090_v22 = vpack.c.bf16 %v951_v18, %v951_v18  ;;  %v1077_v50 = vadd.f32 %v1949_v48, %v1076_v49  ;;  %v2037_v51 = vpop.f32.mrb[1].mxu0 }
 0x19d   : > { %v1079_v52 = vpop.f32.mrb[2].mxu0  ;;  %v2219_v11 = vld [vmem:[%s3287_s5] sm:$0xff]  }
 0x19e   : > { %v1092_v53 = vpack.c.bf16 %v1077_v50, %v1077_v50  ;;  %v2038_v54 = vpop.f32.mrb[3].mxu0  ;;  %v1963_v50 = vld [vmem:[%s3293_s20] ss:$0 sm:$0xff] }
 0x19f   : > { %v2225_v54 = vld [vmem:[%s2931_s17 + $0x10] sm:$0xff]  }
 0x1a0   : > { %v1160_v55 = vsel %vm1158_vm6, %v1092_v53, 0 }
 0x1a1   : > { %v1013_v14 = vpop.f32.mrb[4].mxu1  ;;  %2046 = vmatpush3.bf16.msra.mxu0 %v1160_v55  ;;  %v2226_v55 = vld [vmem:[%s2931_s17 + $0x18] sm:$0xff]  }
 0x1a2   : > { %v1014_v15 = vadd.f32 %v1945_v12, %v1013_v14  ;;  %v2029_v16 = vpop.f32.mrb[5].mxu1  ;;  %2057 = vmatprep.subr.bf16.mxu0 %v2475_v2 }
 0x1a3   : > { %v1016_v17 = vpop.f32.mrb[6].mxu1 }
 0x1a4   : > { %v1091_v19 = vpack.c.bf16 %v1014_v15, %v1014_v15  ;;  %v2030_v20 = vpop.f32.mrb[7].mxu1 }
 0x1a6   : > { %v1098_v21 = vsel %vm1093_vm3, %v1091_v19, 0  ;;  %1207 = vrot.lane.b32.xlu0 %v1091_v19, %s2477_s30 }
 0x1a7   : > { %2040 = vmatpush3.bf16.xpose.msra.mxu1 %v1098_v21 }
 0x1a8   : > { %2051 = vmatprep.subr.bf16.mxu1 %v2475_v2 }
 0x1aa   : > { %1204 = vrot.lane.b32.xlu0 %v1090_v22, %s2477_s30 }
 0x1ae   : > { %2042 = vmatmul.mubr.msk.bf16.vlgmr.msra.gmra.mrb[8].mxu1 %vm1093_vm3, %v1090_v22 }
 0x1af   : > { %2053 = vmatprep.mubr.msk.bf16.mxu1 %vm2476_vm1, %v2475_v2 }
 0x218   : > { %v1208_v25 = vpop.permute.xlu0 %1207 }
 0x219   : > { %v1213_v26 = vsel %vm1093_vm3, %v1208_v25, 0 }
 0x21a   : > { %2052 = vmatpush3.bf16.xpose.msra.mxu1 %v1213_v26 }
 0x21b   : > { %2063 = vmatprep.subr.bf16.mxu1 %v2475_v2 }
 0x21c   : > { %v1205_v27 = vpop.permute.xlu0 %1204 }
 0x221   : > { %2054 = vmatmul.mubr.msk.bf16.vlgmr.msra.gmra.mrb[12].mxu1 %vm1093_vm3, %v1205_v27 }
 0x222   : > { %2065 = vmatprep.mubr.msk.bf16.mxu1 %vm2476_vm1, %v2475_v2  ;;  %2064 = vmatpush3.bf16.msra.mxu1 %v2220_v5 }
 0x223   : > { %2075 = vmatprep.subr.bf16.mxu1 %v2475_v2 }
 0x281   : > { %v1134_v31 = vpop.f32.mrb[8].mxu1 }
 0x282   : > { %v1140_v32 = vmul.f32 0.25, %v1134_v31  ;;  %v2043_v33 = vpop.f32.mrb[9].mxu1 }
 0x283   : > { %v1137_v34 = vpop.f32.mrb[10].mxu1 }
 0x284   : > { %v2044_v35 = vpop.f32.mrb[11].mxu1  ;;  %v1141_v36 = vsel %vm1085_vm4, %v1140_v32, -1000000.0 }
 0x285   : > { %v1143_v37 = vsel %vm1142_vm5, %v1141_v36, -inf }
 0x286   : > { %1144 = vmax.xlane.f32.xlu1 %v1143_v37 }
 0x2f4   : > { %v1249_v38 = vpop.f32.mrb[12].mxu1 }
 0x2f5   : > { %v1255_v39 = vmul.f32 0.25, %v1249_v38  ;;  %v2055_v40 = vpop.f32.mrb[13].mxu1 }
 0x2f6   : > { %v1252_v41 = vpop.f32.mrb[14].mxu1 }
 0x2f7   : > { %v2056_v42 = vpop.f32.mrb[15].mxu1  ;;  %v1256_v43 = vsel %vm1085_vm4, %v1255_v39, -1000000.0  ;;  %v2221_v41 = vld [vmem:[%s717_s29] sm:$0xff]  }
 0x2f8   : > { %v1257_v44 = vsel %vm1142_vm5, %v1256_v43, -inf  ;;  %v2223_v42 = vld [vmem:[%s2931_s17] sm:$0xff]  }
 0x2f9   : > { %1258 = vmax.xlane.f32.xlu1 %v1257_v44 }
 0x313   : > { %v1145_v45 = vpop.xlane.xlu1 %1144 }
 0x314   : > { %v1146_v46 = vsub.f32 %v1141_v36, %v1145_v45 }
 0x316   : > { %v1147_v47 = vmul.f32 1.442695, %v1146_v46 }
 0x318   : > { %2227 = vpow2.f32 %v1147_v47 }
 0x322   : > { %v2228_v56 = vpop.eup %2227 }
 0x323   : > { %v1149_v57 = vsel %vm1142_vm5, %v2228_v56, 0.0 }
 0x324   : > { %1150 = vadd.xlane.f32.xlu0 %v1149_v57 }
 0x386   : > { %v1259_v58 = vpop.xlane.xlu1 %1258 }
 0x387   : > { %v1260_v59 = vsub.f32 %v1256_v43, %v1259_v58  ;;  %v2224_v43 = vld [vmem:[%s2931_s17 + $0x8] sm:$0xff]  }
 0x389   : > { %v1261_v60 = vmul.f32 1.442695, %v1260_v59 }
 0x38b   : > { %2229 = vpow2.f32 %v1261_v60 }
 0x395   : > { %v2230_v61 = vpop.eup %2229 }
 0x396   : > { %v1263_v62 = vsel %vm1142_vm5, %v2230_v61, 0.0 }
 0x397   : > { %1264 = vadd.xlane.f32.xlu1 %v1263_v62 }
 0x3a8   : > { %1270 = vrot.lane.b32.xlu1 %v1092_v53, %s2477_s30 }
 0x3b1   : > { %v1151_v63 = vpop.xlane.xlu0 %1150 }
 0x3b2   : > { %2231 = vrcp.f32 %v1151_v63 }
 0x3bc   : > { %v2232_v0 = vpop.eup %2231 }
 0x3bd   : > { %v1153_v1 = vmul.f32 %v2232_v0, %v2228_v56  ;;  %v1964_v56 = vld [vmem:[%s863_s26] ss:$0 sm:$0xff]  ;;  %s3296_s26 = sld [smem:[#allocation20_spill]] }
 0x3bf   : > { %v1154_v3 = vpack.c.bf16 %v1153_v1, %v1153_v1 }
 0x3c1   : > { %2048 = vmatmul.mubr.msk.bf16.vlgmr.msra.gmra.mrb[4].mxu0 %vm1142_vm5, %v1154_v3 }
 0x3c2   : > { %2059 = vmatprep.mubr.msk.bf16.mxu0 %vm2476_vm1, %v2475_v2 }
 0x3c3   : > { %s1977_s8 = sshll.u32 %s3296_s26, 7 }
 0x3c4   : > { %s3096_s12 = scalar_lea.hbm %s3300_s18, %s1977_s8 }
 0x424   : > { %v1265_v6 = vpop.xlane.xlu1 %1264 }
 0x425   : > { %2233 = vrcp.f32 %v1265_v6 }
 0x428   : > { %v1271_v7 = vpop.permute.xlu1 %1270 }
 0x429   : > { %v1276_v8 = vsel %vm1158_vm6, %v1271_v7, 0 }
 0x42a   : > { %2058 = vmatpush3.bf16.msra.mxu0 %v1276_v8 }
 0x42b   : > { %2069 = vmatprep.subr.bf16.mxu0 %v2475_v2 }
 0x42f   : > { %v2234_v9 = vpop.eup %2233 }
 0x430   : > { %v1267_v10 = vmul.f32 %v2234_v9, %v2230_v61 }
 0x432   : > { %v1268_v12 = vpack.c.bf16 %v1267_v10, %v1267_v10 }
 0x434   : > { %2060 = vmatmul.mubr.msk.bf16.vlgmr.msra.gmra.mrb[8].mxu0 %vm1142_vm5, %v1268_v12 }
 0x435   : > { %2070 = vmatpush3.bf16.msra.mxu0 %v2219_v11  ;;  %2071 = vmatprep.mubr.msk.bf16.mxu0 %vm2476_vm1, %v2475_v2 }
 0x436   : > { %2083 = vmatprep.subr.bf16.mxu0 %v2475_v2 }
 0x494   : > { %v1196_v13 = vpop.f32.mrb[4].mxu0 }
 0x495   : > { %v1202_v14 = vpack.c.bf16 %v1196_v13, %v1196_v13  ;;  %v2049_v15 = vpop.f32.mrb[5].mxu0 }
 0x496   : > { %v1199_v16 = vpop.f32.mrb[6].mxu0 }
 0x497   : > { %v2050_v17 = vpop.f32.mrb[7].mxu0  ;;  %2072 = vmatmul.mubr.msk.bf16.vlgmr.msra.gmra.mrb[12].mxu0 %vm1093_vm3, %v1202_v14 }
 0x498   : > { %2091 = vmatprep.mubr.msk.bf16.mxu0 %vm2476_vm1, %v2475_v2  ;;  %2084 = vmatpush3.bf16.msra.mxu0 %v2223_v42 }
 0x499   : > { %2085 = vmatprep.subr.bf16.mxu0 %v2475_v2 }
 0x49c   : > { %2086 = vmatpush3.bf16.msra.mxu0 %v2224_v43 }
 0x49d   : > { %2087 = vmatprep.subr.bf16.mxu0 %v2475_v2 }
 0x4a0   : > { %2088 = vmatpush3.bf16.msra.mxu0 %v2225_v54 }
 0x4a1   : > { %2089 = vmatprep.subr.bf16.mxu0 %v2475_v2 }
 0x4a4   : > { %2090 = vmatpush3.bf16.msra.mxu0 %v2226_v55 }
 0x507   : > { %v1312_v18 = vpop.f32.mrb[8].mxu0 }
 0x508   : > { %v1318_v19 = vpack.c.bf16 %v1312_v18, %v1312_v18  ;;  %v2061_v20 = vpop.f32.mrb[9].mxu0  ;;  %v1974_v18 = vld [vmem:[%s874_s0] ss:$0 sm:$0xff]  ;;  %s1640_s0 = scalar_lea.sflag [#allocation6], %s2857_s2 }
 0x509   : > { %v1315_v21 = vpop.f32.mrb[10].mxu0  ;;  %v1975_v20 = vld [vmem:[%s877_s21] ss:$0 sm:$0xff] }
 0x50a   : > { %v2062_v22 = vpop.f32.mrb[11].mxu0  ;;  %2066 = vmatmul.mubr.msk.bf16.vlgmr.msra.gmra.mrb[16].mxu1 %vm1093_vm3, %v1318_v19 }
 0x50b   : > { %2079 = vmatprep.mubr.msk.bf16.mxu1 %vm2476_vm1, %v2475_v2  ;;  %2076 = vmatpush3.bf16.msra.mxu1 %v2221_v41 }
 0x50c   : > { %2077 = vmatprep.subr.bf16.mxu1 %v2475_v2  ;;  %v1968_v2 = vld [vmem:[%s871_s24] ss:$0 sm:$0xff]  ;;  %s3297_s24 = sld [smem:[#allocation27_spill]] }
 0x512   : > { %p3301_p6 = scmp.ne.s32.totalorder %s3297_s24, 0 }
 0x56a   : > { %v1411_v23 = vpop.f32.mrb[12].mxu0 }
 0x56b   : > { %v2073_v24 = vpop.f32.mrb[13].mxu0 }
 0x56c   : > { %v1414_v25 = vpop.f32.mrb[14].mxu0 }
 0x56d   : > { %v2074_v26 = vpop.f32.mrb[15].mxu0 }
 0x5dd   : > { %v1362_v27 = vpop.f32.mrb[16].mxu1 }
 0x5de   : > { %v1412_v29 = vadd.f32 %v1411_v23, %v1362_v27  ;;  %v2067_v30 = vpop.f32.mrb[17].mxu1 }
 0x5df   : > { %v1365_v31 = vpop.f32.mrb[18].mxu1 }
 0x5e0   : > { %v1424_v32 = vadd.f32 %v1961_v28, %v1412_v29  ;;  %v2068_v33 = vpop.f32.mrb[19].mxu1 }
 0x5e2   : > { %v1425_v34 = vadd.f32 %v1424_v32, %v2958_v4  ;;  %v2222_v4 = vld [vmem:[%s717_s29 + $0x8] sm:$0xff]   ;;  %s3291_s29 = scalar_lea.vmem %s3290_s13, %s2883_s16  ;;  %s2339_s13 = scalar_lea.vmem %s3098_s9, 128 }
 0x5e3   : > { %2078 = vmatpush3.bf16.msra.mxu1 %v2222_v4  ;;  %v1962_v48 = vld [vmem:[%s3291_s29] ss:$0 sm:$0xff]  ;;  %p2340_p0 = scmp.ne.s32.totalorder %s3098_s9, %s2339_s13  ;;  %s2478_s16 = smov [#allocation10]  }
 0x5e4   : > { %v1428_v35 = vsel %vm912_vm2, %v1425_v34, 0.0  ;;  %s2343_s21 = sshll.u32 %s2478_s16, 4  ;;  %s2344_s21 = int_to_ptr.vmem [resolvable:$false] %s2343_s21 }
 0x5e5   : > { %1429 = vadd.xlane.f32.xlu1 %v1428_v35  ;;  %p2341_p12 = pnand %p2340_p0, %p3301_p6  ;;  %s2345_s29 = scalar_lea.vmem %s2344_s21, 256 }
 0x5e6   : > { %p2346_p11 = scmp.lt.s32.totalorder %s3098_s9, %s2344_s21  ;;  %p2347_p2 = scmp.lt.s32.totalorder %s2345_s29, %s2339_s13 }
 0x5e7   : > { %p2342_p8 = pneg %p2341_p12 }
 0x5e8   : > { %p2348_p1 = por %p2347_p2, %p2346_p11 }
 0x5ea   : > { %p2349_p5 = pnand %p2348_p1, %p2342_p8 }
 0x672   : > { %v1430_v36 = vpop.xlane.xlu1 %1429 }
 0x673   : > { %v1432_v37 = vmul.f32 0.03125, %v1430_v36 }
 0x675   : > { %v1433_v38 = vsub.f32 %v1425_v34, %v1432_v37 }
 0x677   : > { %v1434_v39 = vmul.f32 %v1433_v38, %v1433_v38 }
 0x679   : > { %v1435_v40 = vsel %vm912_vm2, %v1434_v39, 0.0 }
 0x67a   : > { %1436 = vadd.xlane.f32.xlu0 %v1435_v40 }
 0x707   : > { %v1437_v44 = vpop.xlane.xlu0 %1436 }
 0x708   : > { %v1438_v45 = vmul.f32 0.03125, %v1437_v44 }
 0x70a   : > { %v1439_v46 = vadd.f32 1e-05, %v1438_v45 }
 0x70c   : > { %2235 = vrsqrt.f32 %v1439_v46 }
 0x716   : > { %v2236_v47 = vpop.eup %2235 }
 0x717   : > { %v1441_v49 = vmul.f32 %v2236_v47, %v1433_v38 }
 0x719   : > { %v1448_v51 = vmul.f32 %v1962_v48, %v1441_v49 }
 0x71b   : > { %v1455_v52 = vadd.f32 %v1963_v50, %v1448_v51 }
 0x71d   : > { %v1456_v53 = vpack.c.bf16 %v1455_v52, %v1455_v52 }
 0x71f   : > { %2080 = vmatmul.mubr.msk.bf16.vlgmr.msra.gmra.mrb[20].mxu1 %vm912_vm2, %v1456_v53 }
 0x7f2   : > { %v1517_v57 = vpop.f32.mrb[20].mxu1 }
 0x7f3   : > { %v1518_v58 = vadd.f32 %v1964_v56, %v1517_v57  ;;  %v2081_v59 = vpop.f32.mrb[21].mxu1 }
 0x7f4   : > { %v1520_v60 = vpop.f32.mrb[22].mxu1 }
 0x7f5   : > { %v1523_v61 = vmax.f32 %v1518_v58, 0.0  ;;  %v2082_v62 = vpop.f32.mrb[23].mxu1 }
 0x7f7   : > { %v1524_v63 = vpack.c.bf16 %v1523_v61, %v1523_v61 }
 0x7f9   : > { %2092 = vmatmul.mubr.msk.bf16.vlgmr.msra.gmra.mrb[16].mxu0 %vm1564_vm7, %v1524_v63 }
 0x8cc   : > { %v1602_v0 = vpop.f32.mrb[16].mxu0 }
 0x8cd   : > { %v1603_v1 = vadd.f32 %v1968_v2, %v1602_v0  ;;  %v2093_v3 = vpop.f32.mrb[17].mxu0 }
 0x8ce   : > { %v1605_v5 = vpop.f32.mrb[18].mxu0 }
 0x8cf   : > { %v2094_v6 = vpop.f32.mrb[19].mxu0  ;;  %v1608_v7 = vadd.f32 %v1603_v1, %v1455_v52 }
 0x8d1   : > { %v1611_v8 = vsel %vm912_vm2, %v1608_v7, 0.0 }
 0x8d2   : > { %1612 = vadd.xlane.f32.xlu0 %v1611_v8 }
 0x95f   : > { %v1613_v9 = vpop.xlane.xlu0 %1612 }
 0x960   : > { %v1614_v10 = vmul.f32 0.03125, %v1613_v9 }
 0x962   : > { %v1615_v11 = vsub.f32 %v1608_v7, %v1614_v10 }
 0x964   : > { %v1616_v12 = vmul.f32 %v1615_v11, %v1615_v11 }
 0x966   : > { %v1617_v13 = vsel %vm912_vm2, %v1616_v12, 0.0 }
 0x967   : > { %1618 = vadd.xlane.f32.xlu0 %v1617_v13 }
 0x9f4   : > { %v1619_v14 = vpop.xlane.xlu0 %1618 }
 0x9f5   : > { %v1620_v15 = vmul.f32 0.03125, %v1619_v14 }
 0x9f7   : > { %v1621_v16 = vadd.f32 1e-05, %v1620_v15 }
 0x9f9   : > { %2237 = vrsqrt.f32 %v1621_v16 }
 0xa03   : > { %v2238_v17 = vpop.eup %2237 }
 0xa04   : > { %v1623_v19 = vmul.f32 %v2238_v17, %v1615_v11 }
 0xa06   : > { %v1630_v21 = vmul.f32 %v1974_v18, %v1623_v19 }
 0xa08   : > { %v1637_v22 = vadd.f32 %v1975_v20, %v1630_v21 }
 0xa0a   : > { %1638 = vst.msk [vmem:[%s2948_s23] sm:$0xff] %vm912_vm2, %v1637_v22 }
 0xa0b   : > { %2352 = shalt.err (!%p2349_p5)
}
 0xa0c   : > { %s2353_s2 = scalar_lea.hbm %s3096_s12, 128  ;;  %s2357_s27 = scalar_lea.hbm %s3300_s18, 256 }
 0xa0d   : > { %p2354_p4 = scmp.ne.s32.totalorder %s3096_s12, %s2353_s2  ;;  %p2358_p9 = scmp.lt.u32.totalorder %s3096_s12, %s3300_s18 }
 0xa0e   : > { %p2359_p10 = scmp.lt.u32.totalorder %s2357_s27, %s2353_s2  ;;  %p2361_p0 = scmp.lt.u32.totalorder %s2353_s2, %s3096_s12 }
 0xa0f   : > { %p2355_p13 = pnand %p2354_p4, %p3301_p6 }
 0xa10   : > { %p2360_p7 = por %p2359_p10, %p2358_p9 }
 0xa11   : > { %p2356_p3 = pneg %p2355_p13 }
 0xa12   : > { %p2362_p12 = por %p2361_p0, %p2360_p7 }
 0xa14   : > { %p2363_p8 = pnand %p2362_p12, %p2356_p3 }
 0xa16   : > { %2366 = shalt.err (!%p2363_p8)
}
 0xa17   : > { %2101 = dma.vmem_to_hbm [thread:$0]  (%p3301_p6), %s3098_s9, 128, %s3096_s12, %s1640_s0  }
 0xa18 PF: > { %s3302_s6 = sld [smem:[#allocation23_spill]]  ;;  %s3303_s11 = sld [smem:[#allocation17_spill]] }
 0xa19   : > { %s3304_s10 = sld [smem:[#allocation29_spill]] }
 0xa1e   : > { %p2118_p11 = scmp.ge.s32.totalorder %s3302_s6, 2  ;;  %s1665_s3 = sand.u32 1, %s3303_s11  }
 0xa1f   : > { %p3305_p2 = scmp.ne.s32.totalorder %s3304_s10, 0  ;;  %s1666_s4 = scalar_lea.sflag [#allocation6], %s1665_s3 }
 0xa21   : > { %p2114_p1 = pnand %p2118_p11, %p3305_p2 }
 0xa23   : > { %2422 = dma.done.wait (!%p2114_p1), %s1666_s4, 128  }
 0xa24   : > { %2424 = vsyncadd (!%p2114_p1), %s1666_s4, 4294967168  ;;  %s41_s0 = sadd.s32 1, %s3302_s6   ;;  %s3306_s2 = sld [smem:[#allocation15_spill]] }
 0xa25   : > { %p38_p5 = scmp.ge.s32.totalorder %s41_s0, 6   ;;  %s3307_s23 = sld [smem:[#allocation16_spill]] }
 0xa26   : > { %s3308_s11 = sld [smem:[#allocation25_spill]]  ;;  %s3309_s24 = sld [smem:[#allocation18_spill]] }
 0xa27   : > { %s3310_s25 = sld [smem:[#allocation19_spill]]  ;;  %s3311_s26 = sld [smem:[#allocation28_spill]] }
 0xa28   : > { %s3312_s27 = sld [smem:[#allocation21_spill]]  ;;  %s3313_s28 = sld [smem:[#allocation22_spill]] }
 0xa29   : > { %s3314_s29 = sld [smem:[#allocation24_spill]]  ;;  %s3315_s30 = sld [smem:[#allocation26_spill]] }
 0xa2a   :  { %40 = sbr.rel (!%p38_p5) target bundleno = 37 (0x25), region = 203 }
 0xa31   :  { %1671 = vsyncpa [#allocation5], 1 }
 0xa32   :  { %1673 = vsyncpa [#allocation5 + $0x1], 1 }
 0xa33   :  { %1674 = vsyncpa [#allocation8], 1 }
 0xa34   :  { %1676 = vsyncpa [#allocation8 + $0x1], 1 }
 0xa35   :  { %1677 = vsyncpa [#allocation6], 1 }
 0xa36   :  { %1679 = vsyncpa [#allocation6 + $0x1], 1 }

</bundles_post_ra>
